<compile_context>
chip_gen: v7x
topology: tpu7x:2x2x1
jax: 0.10.0
libtpu: 0.0.40
codegen_flags: <defaults>
</compile_context>

<pallas_src>
import jax
import jax.numpy as jnp
import numpy as np
from jax.experimental import pallas as pl
from jax.experimental.pallas import tpu as pltpu


# ---------------------------------------------------------------------------
# Pallas kernel: full NetTransform hot path for one batch element.
# ---------------------------------------------------------------------------
def _net_transform_kernel(ilens_ref, xs_in_ref, xs_out_ref,
                          w1_ref, b1_ref, w2_ref, b2_ref,
                          w3_ref, b3_ref, w4_ref, b4_ref,
                          kernel_ref, out_ref, loss_sum_ref):
    T = xs_in_ref.shape[1]
    x = xs_in_ref[0]          # (T, D)  encoder input  (xs_pad_in[:, 0])
    y = xs_out_ref[0]         # (T, D)  target         (xs_pad_out[:, 0])

    def affine(a, w_ref, b_ref):
        # bf16 operands on the MXU, f32 accumulation, f32 bias add.
        return jax.lax.dot_general(
            a.astype(jnp.bfloat16), w_ref[...],
            (((1,), (0,)), ((), ())),
            preferred_element_type=jnp.float32) + b_ref[...]

    def mvn_rescale(a, tgt_m, tgt_v):
        # NOTE: divides by *variance*, matching the reference module.
        m = jnp.mean(a, axis=-1, keepdims=True)
        v = jnp.mean((a - m) ** 2, axis=-1, keepdims=True)
        # All-zero padded rows have v == 0; clamp so they stay finite (they are
        # excluded from the loss and sliced off the outputs anyway).
        v = jnp.where(v > 0.0, v, 1.0)
        inv_v = pl.reciprocal(v, approx=True)   # EUP slot, frees the VALU
        return (a - m) * inv_v * tgt_v + tgt_m

    # ----- input statistics (mean / variance over feature dim) -----
    m_in = jnp.mean(x, axis=-1, keepdims=True)
    v_in = jnp.mean((x - m_in) ** 2, axis=-1, keepdims=True)

    # ----- engine.encoder (MLP) -> h_h, then mvn + rescale -----
    h = affine(jnp.maximum(affine(x, w1_ref, b1_ref), 0.0), w2_ref, b2_ref)
    h = mvn_rescale(h, m_in, v_in)

    # ----- similarity kernel = sigmoid(h_h @ h_h^T)  (bf16 output) -----
    hb = h.astype(jnp.bfloat16)
    logits = jax.lax.dot_general(hb, hb, (((1,), (1,)), ((), ())),
                                 preferred_element_type=jnp.float32)
    kernel_ref[0] = jax.nn.sigmoid(logits).astype(kernel_ref.dtype)

    # ----- engine.decoder_high (MLP), then mvn + rescale with target stats -----
    y_hat = affine(jnp.maximum(affine(hb, w3_ref, b3_ref), 0.0), w4_ref, b4_ref)
    m_out = jnp.mean(y, axis=-1, keepdims=True)
    v_out = jnp.mean((y - m_out) ** 2, axis=-1, keepdims=True)
    y_hat = mvn_rescale(y_hat, m_out, v_out)
    out_ref[0] = y_hat.astype(out_ref.dtype)

    # ----- SeqMultiMaskLoss: masked MSE partial sum (finalized in wrapper) -----
    ilen = ilens_ref[pl.program_id(0)]
    row_ids = jax.lax.broadcasted_iota(jnp.int32, (T, 1), 0)
    valid = row_ids < ilen                           # (T, 1) bool, built in-kernel
    diff = y_hat - y
    err = jnp.where(valid, diff * diff, 0.0)         # where() also kills padded rows
    loss_sum_ref[0] = jnp.sum(err, axis=(0, 1), keepdims=True)


# ---------------------------------------------------------------------------
# Wrapper
# ---------------------------------------------------------------------------
def net_transform_forward(xs_pad_in, xs_pad_out, ilens, params):
    """xs_pad_in: (B, T_full, idim); xs_pad_out: (B, T_full, tnum, idim)."""
    ilens_np = np.asarray(ilens, dtype=np.int32)
    T_orig = int(ilens_np.max())
    # Bucket the time axis to a multiple of 128: lane-dense (T,T)/(T,D) stores and
    # no per-batch-length recompilation.
    T = max(128, ((T_orig + 127) // 128) * 128)

    xs_in = xs_pad_in[:, :T_orig].astype(jnp.float32)                 # (B, T_orig, D)
    # torch: xs_pad_out[:, :T].transpose(1, 2)[:, 0:1]  ==  xs_pad_out[:, :T, 0, :]
    xs_out0 = xs_pad_out[:, :T_orig, 0, :].astype(jnp.float32)        # (B, T_orig, D)

    B, _, D = xs_in.shape
    H = params["w1"].shape[1]

    pad_t = T - T_orig
    if pad_t:
        xs_in = jnp.pad(xs_in, ((0, 0), (0, pad_t), (0, 0)))
        xs_out0 = jnp.pad(xs_out0, ((0, 0), (0, pad_t), (0, 0)))

    ilens_dev = jnp.asarray(ilens_np, dtype=jnp.int32)                # scalar-prefetch

    bf16 = jnp.bfloat16
    w1 = params["w1"].astype(bf16); w2 = params["w2"].astype(bf16)
    w3 = params["w3"].astype(bf16); w4 = params["w4"].astype(bf16)
    b1 = params["b1"].astype(jnp.float32); b2 = params["b2"].astype(jnp.float32)
    b3 = params["b3"].astype(jnp.float32); b4 = params["b4"].astype(jnp.float32)

    # index_maps receive the scalar-prefetch ref (ilens) as a trailing positional arg.
    batched = lambda shape: pl.BlockSpec((1,) + shape, lambda b, il: (b, 0, 0))
    whole = lambda a: pl.BlockSpec(a.shape, lambda b, il: (0, 0))

    grid_spec = pltpu.PrefetchScalarGridSpec(
        num_scalar_prefetch=1,
        grid=(B,),
        in_specs=[
            batched((T, D)),          # xs_in
            batched((T, D)),          # xs_out0
            whole(w1), whole(b1),     # encoder layer 1
            whole(w2), whole(b2),     # encoder layer 2
            whole(w3), whole(b3),     # decoder layer 1
            whole(w4), whole(b4),     # decoder layer 2
        ],
        out_specs=[
            batched((T, T)),          # similarity kernel (bf16)
            batched((T, D)),          # xs_pad_out_h_hat
            batched((1, 1)),          # per-batch masked-MSE sum
        ],
    )

    # VMEM budget: double-buffered bf16 (T,T) block + three f32 (T,D) streams.
    est_vmem = 2 * (T * T * 2) + 6 * (T * D * 4) + 4 * (D * H + H * D + H + D) + (1 << 16)
    vmem_limit = int(min(est_vmem * 2, 60 * (1 << 20))) if est_vmem > 30 * (1 << 20) else None

    kern, out, loss_sum = pl.pallas_call(
        _net_transform_kernel,
        grid_spec=grid_spec,
        out_shape=(
            jax.ShapeDtypeStruct((B, T, T), jnp.bfloat16),
            jax.ShapeDtypeStruct((B, T, D), jnp.float32),
            jax.ShapeDtypeStruct((B, 1, 1), jnp.float32),
        ),
        compiler_params=pltpu.CompilerParams(
            dimension_semantics=("parallel",),    # disjoint per-batch blocks -> safe
            vmem_limit_bytes=vmem_limit),
    )(ilens_dev, xs_in, xs_out0, w1, b1, w2, b2, w3, b3, w4, b4)

    # Valid-element count is deterministic from ilens; no need for a kernel output.
    cnt = jnp.sum(ilens_dev).astype(jnp.float32) * jnp.float32(D)
    loss = jnp.sum(loss_sum) / cnt
    return loss, kern[:, :T_orig, :T_orig], out[:, :T_orig]


# ---------------------------------------------------------------------------
# Pure-JAX reference (same math, same bf16 matmul operands) for correctness
# ---------------------------------------------------------------------------
def reference_forward(xs_pad_in, xs_pad_out, ilens, p):
    ilens_np = np.asarray(ilens)
    T = int(ilens_np.max())
    bf = jnp.bfloat16
    f32 = jnp.float32
    x = xs_pad_in[:, :T].astype(f32)
    y = xs_pad_out[:, :T, 0, :].astype(f32)
    B, _, D = x.shape
    w1, w2, w3, w4 = (p[k].astype(bf) for k in ("w1", "w2", "w3", "w4"))

    h = jnp.einsum("btd,dh->bth", x.astype(bf), w1, preferred_element_type=f32) + p["b1"]
    h = jnp.maximum(h, 0.0)
    h = jnp.einsum("bth,hd->btd", h.astype(bf), w2, preferred_element_type=f32) + p["b2"]

    m_in = jnp.mean(x, -1, keepdims=True)
    v_in = jnp.mean((x - m_in) ** 2, -1, keepdims=True)
    mh = jnp.mean(h, -1, keepdims=True)
    vh = jnp.mean((h - mh) ** 2, -1, keepdims=True)
    h = (h - mh) / vh * v_in + m_in

    hb = h.astype(bf)
    kern = jax.nn.sigmoid(jnp.einsum("btd,bsd->bts", hb, hb, preferred_element_type=f32))

    d = jnp.einsum("btd,dh->bth", hb, w3, preferred_element_type=f32) + p["b3"]
    d = jnp.maximum(d, 0.0)
    y_hat = jnp.einsum("bth,hd->btd", d.astype(bf), w4, preferred_element_type=f32) + p["b4"]

    my = jnp.mean(y_hat, -1, keepdims=True)
    vy = jnp.mean((y_hat - my) ** 2, -1, keepdims=True)
    m_out = jnp.mean(y, -1, keepdims=True)
    v_out = jnp.mean((y - m_out) ** 2, -1, keepdims=True)
    y_hat = (y_hat - my) / vy * v_out + m_out

    valid = (jnp.arange(T)[None, :] < jnp.asarray(ilens_np)[:, None]).astype(f32)
    err = (y_hat - y) ** 2 * valid[:, :, None]
    loss = jnp.sum(err) / (jnp.sum(valid) * D)
    return loss, kern, y_hat


if __name__ == "__main__":
    # Small shapes consistent with the module: raw idim = 11 -> self.idim = 8.
    B, T_full, D, H, TNUM = 2, 16, 8, 32, 2
    key = jax.random.PRNGKey(0)
    k = jax.random.split(key, 10)

    xs_pad_in = jax.random.normal(k[0], (B, T_full, D), jnp.float32)
    xs_pad_out = jax.random.normal(k[1], (B, T_full, TNUM, D), jnp.float32)
    ilens = np.array([16, 12], dtype=np.int32)

    def init(kk, shape):
        fan_in = shape[0]
        return (jax.random.normal(kk, shape, jnp.float32) / np.sqrt(fan_in)).astype(jnp.float32)

    params = {
        "w1": init(k[2], (D, H)), "b1": jnp.zeros((1, H), jnp.float32),
        "w2": init(k[3], (H, D)), "b2": jnp.zeros((1, D), jnp.float32),
        "w3": init(k[4], (D, H)), "b3": jnp.zeros((1, H), jnp.float32),
        "w4": init(k[5], (H, D)), "b4": jnp.zeros((1, D), jnp.float32),
    }

    loss, kern, out = net_transform_forward(xs_pad_in, xs_pad_out, ilens, params)
    jax.block_until_ready((loss, kern, out))

    loss_r, kern_r, out_r = reference_forward(xs_pad_in, xs_pad_out, ilens, params)
    np.testing.assert_allclose(np.asarray(kern.astype(jnp.float32)), np.asarray(kern_r),
                               rtol=2e-2, atol=2e-2)
    np.testing.assert_allclose(np.asarray(out), np.asarray(out_r), rtol=2e-2, atol=2e-2)
    np.testing.assert_allclose(np.asarray(loss), np.asarray(loss_r), rtol=5e-2, atol=5e-2)

    print("KERNEL_OK")
</pallas_src>

<mosaic_0001>
module attributes {stable_mosaic.version = 11 : i64} {
  func.func @_net_transform_kernel(%arg0: i32, %arg1: memref<2xi32, #tpu.memory_space<smem>>, %arg2: memref<1x128x8xf32, #tpu.memory_space<vmem>>, %arg3: memref<1x128x8xf32, #tpu.memory_space<vmem>>, %arg4: memref<8x32xbf16, #tpu.memory_space<vmem>>, %arg5: memref<1x32xf32, #tpu.memory_space<vmem>>, %arg6: memref<32x8xbf16, #tpu.memory_space<vmem>>, %arg7: memref<1x8xf32, #tpu.memory_space<vmem>>, %arg8: memref<8x32xbf16, #tpu.memory_space<vmem>>, %arg9: memref<1x32xf32, #tpu.memory_space<vmem>>, %arg10: memref<32x8xbf16, #tpu.memory_space<vmem>>, %arg11: memref<1x8xf32, #tpu.memory_space<vmem>>, %arg12: memref<1x128x128xbf16, #tpu.memory_space<vmem>>, %arg13: memref<1x128x8xf32, #tpu.memory_space<vmem>>, %arg14: memref<1x1x1xf32, #tpu.memory_space<vmem>>) attributes {dimension_semantics = [#tpu.dimension_semantics<parallel>], iteration_bounds = array<i64: 2>, scalar_prefetch = 1 : i64, scratch_operands = 0 : i64, tpu.core_type = #tpu.core_type<tc>, window_params = [{transform_indices = @transform_0, window_bounds = array<i64: 1, 128, 8>}, {transform_indices = @transform_1, window_bounds = array<i64: 1, 128, 8>}, {pipeline_mode = #tpu.pipeline_mode<synchronous>, transform_indices = @transform_2, window_bounds = array<i64: 8, 32>}, {pipeline_mode = #tpu.pipeline_mode<synchronous>, transform_indices = @transform_3, window_bounds = array<i64: 1, 32>}, {pipeline_mode = #tpu.pipeline_mode<synchronous>, transform_indices = @transform_4, window_bounds = array<i64: 32, 8>}, {pipeline_mode = #tpu.pipeline_mode<synchronous>, transform_indices = @transform_5, window_bounds = array<i64: 1, 8>}, {pipeline_mode = #tpu.pipeline_mode<synchronous>, transform_indices = @transform_6, window_bounds = array<i64: 8, 32>}, {pipeline_mode = #tpu.pipeline_mode<synchronous>, transform_indices = @transform_7, window_bounds = array<i64: 1, 32>}, {pipeline_mode = #tpu.pipeline_mode<synchronous>, transform_indices = @transform_8, window_bounds = array<i64: 32, 8>}, {pipeline_mode = #tpu.pipeline_mode<synchronous>, transform_indices = @transform_9, window_bounds = array<i64: 1, 8>}, {transform_indices = @transform_10, window_bounds = array<i64: 1, 128, 128>}, {transform_indices = @transform_11, window_bounds = array<i64: 1, 128, 8>}, {transform_indices = @transform_12, window_bounds = array<i64: 1, 1, 1>}]} {
    %c0 = arith.constant 0 : index
    %c0_0 = arith.constant 0 : index
    %c0_1 = arith.constant 0 : index
    %0 = vector.load %arg2[%c0, %c0_0, %c0_1] : memref<1x128x8xf32, #tpu.memory_space<vmem>>, vector<1x128x8xf32>
    %1 = vector.shape_cast %0 : vector<1x128x8xf32> to vector<128x8xf32>
    %c0_2 = arith.constant 0 : index
    %c0_3 = arith.constant 0 : index
    %c0_4 = arith.constant 0 : index
    %2 = vector.load %arg3[%c0_2, %c0_3, %c0_4] : memref<1x128x8xf32, #tpu.memory_space<vmem>>, vector<1x128x8xf32>
    %3 = vector.shape_cast %2 : vector<1x128x8xf32> to vector<128x8xf32>
    %cst = arith.constant dense<0.000000e+00> : vector<128xf32>
    %4 = vector.multi_reduction <add>, %1, %cst [1] : vector<128x8xf32> to vector<128xf32>
    %5 = vector.shape_cast %4 : vector<128xf32> to vector<128x1xf32>
    %cst_5 = arith.constant 8.000000e+00 : f32
    %6 = vector.broadcast %cst_5 : f32 to vector<128x1xf32>
    %7 = arith.divf %5, %6 : vector<128x1xf32>
    %8 = vector.broadcast %7 : vector<128x1xf32> to vector<128x8xf32>
    %9 = arith.subf %1, %8 : vector<128x8xf32>
    %10 = arith.mulf %9, %9 : vector<128x8xf32>
    %cst_6 = arith.constant dense<0.000000e+00> : vector<128xf32>
    %11 = vector.multi_reduction <add>, %10, %cst_6 [1] : vector<128x8xf32> to vector<128xf32>
    %12 = vector.shape_cast %11 : vector<128xf32> to vector<128x1xf32>
    %cst_7 = arith.constant 8.000000e+00 : f32
    %13 = vector.broadcast %cst_7 : f32 to vector<128x1xf32>
    %14 = arith.divf %12, %13 : vector<128x1xf32>
    %15 = arith.truncf %1 : vector<128x8xf32> to vector<128x8xbf16>
    %c0_8 = arith.constant 0 : index
    %c0_9 = arith.constant 0 : index
    %16 = vector.load %arg4[%c0_8, %c0_9] : memref<8x32xbf16, #tpu.memory_space<vmem>>, vector<8x32xbf16>
    %cst_10 = arith.constant dense<0.000000e+00> : vector<128x32xf32>
    %17 = tpu.matmul %15, %16, %cst_10 {dimension_numbers = #tpu.dot_dimension_numbers<[1], [0], [0], [1], [0, 0, 1, 1], [], []>} : vector<128x8xbf16>, vector<8x32xbf16>, vector<128x32xf32> -> vector<128x32xf32>
    %c0_11 = arith.constant 0 : index
    %c0_12 = arith.constant 0 : index
    %18 = vector.load %arg5[%c0_11, %c0_12] : memref<1x32xf32, #tpu.memory_space<vmem>>, vector<1x32xf32>
    %19 = vector.broadcast %18 : vector<1x32xf32> to vector<128x32xf32>
    %20 = arith.addf %17, %19 : vector<128x32xf32>
    %cst_13 = arith.constant 0.000000e+00 : f32
    %21 = vector.broadcast %cst_13 : f32 to vector<128x32xf32>
    %22 = arith.maximumf %20, %21 : vector<128x32xf32>
    %23 = arith.truncf %22 : vector<128x32xf32> to vector<128x32xbf16>
    %c0_14 = arith.constant 0 : index
    %c0_15 = arith.constant 0 : index
    %24 = vector.load %arg6[%c0_14, %c0_15] : memref<32x8xbf16, #tpu.memory_space<vmem>>, vector<32x8xbf16>
    %cst_16 = arith.constant dense<0.000000e+00> : vector<128x8xf32>
    %25 = tpu.matmul %23, %24, %cst_16 {dimension_numbers = #tpu.dot_dimension_numbers<[1], [0], [0], [1], [0, 0, 1, 1], [], []>} : vector<128x32xbf16>, vector<32x8xbf16>, vector<128x8xf32> -> vector<128x8xf32>
    %c0_17 = arith.constant 0 : index
    %c0_18 = arith.constant 0 : index
    %26 = vector.load %arg7[%c0_17, %c0_18] : memref<1x8xf32, #tpu.memory_space<vmem>>, vector<1x8xf32>
    %27 = vector.broadcast %26 : vector<1x8xf32> to vector<128x8xf32>
    %28 = arith.addf %25, %27 : vector<128x8xf32>
    %cst_19 = arith.constant dense<0.000000e+00> : vector<128xf32>
    %29 = vector.multi_reduction <add>, %28, %cst_19 [1] : vector<128x8xf32> to vector<128xf32>
    %30 = vector.shape_cast %29 : vector<128xf32> to vector<128x1xf32>
    %cst_20 = arith.constant 8.000000e+00 : f32
    %31 = vector.broadcast %cst_20 : f32 to vector<128x1xf32>
    %32 = arith.divf %30, %31 : vector<128x1xf32>
    %33 = vector.broadcast %32 : vector<128x1xf32> to vector<128x8xf32>
    %34 = arith.subf %28, %33 : vector<128x8xf32>
    %35 = arith.mulf %34, %34 : vector<128x8xf32>
    %cst_21 = arith.constant dense<0.000000e+00> : vector<128xf32>
    %36 = vector.multi_reduction <add>, %35, %cst_21 [1] : vector<128x8xf32> to vector<128xf32>
    %37 = vector.shape_cast %36 : vector<128xf32> to vector<128x1xf32>
    %cst_22 = arith.constant 8.000000e+00 : f32
    %38 = vector.broadcast %cst_22 : f32 to vector<128x1xf32>
    %39 = arith.divf %37, %38 : vector<128x1xf32>
    %cst_23 = arith.constant 0.000000e+00 : f32
    %40 = vector.broadcast %cst_23 : f32 to vector<128x1xf32>
    %41 = arith.cmpf ogt, %39, %40 : vector<128x1xf32>
    %cst_24 = arith.constant 1.000000e+00 : f32
    %42 = vector.broadcast %cst_24 : f32 to vector<128x1xf32>
    %43 = arith.select %41, %39, %42 : vector<128x1xi1>, vector<128x1xf32>
    %44 = tpu.reciprocal %43 {approx = true} : vector<128x1xf32> -> vector<128x1xf32>
    %45 = vector.broadcast %32 : vector<128x1xf32> to vector<128x8xf32>
    %46 = arith.subf %28, %45 : vector<128x8xf32>
    %47 = vector.broadcast %44 : vector<128x1xf32> to vector<128x8xf32>
    %48 = arith.mulf %46, %47 : vector<128x8xf32>
    %49 = vector.broadcast %14 : vector<128x1xf32> to vector<128x8xf32>
    %50 = arith.mulf %48, %49 : vector<128x8xf32>
    %51 = vector.broadcast %7 : vector<128x1xf32> to vector<128x8xf32>
    %52 = arith.addf %50, %51 : vector<128x8xf32>
    %53 = arith.truncf %52 : vector<128x8xf32> to vector<128x8xbf16>
    %cst_25 = arith.constant dense<0.000000e+00> : vector<128x128xf32>
    %54 = tpu.matmul %53, %53, %cst_25 {dimension_numbers = #tpu.dot_dimension_numbers<[1], [1], [0], [0], [0, 0, 1, 0], [], []>} : vector<128x8xbf16>, vector<128x8xbf16>, vector<128x128xf32> -> vector<128x128xf32>
    %55 = arith.negf %54 : vector<128x128xf32>
    %56 = math.exp %55 : vector<128x128xf32>
    %cst_26 = arith.constant 1.000000e+00 : f32
    %57 = vector.broadcast %cst_26 : f32 to vector<128x128xf32>
    %58 = arith.addf %57, %56 : vector<128x128xf32>
    %59 = arith.divf %57, %58 : vector<128x128xf32>
    %60 = arith.truncf %59 : vector<128x128xf32> to vector<128x128xbf16>
    %c0_27 = arith.constant 0 : index
    %c0_28 = arith.constant 0 : index
    %c0_29 = arith.constant 0 : index
    %61 = vector.load %arg12[%c0_27, %c0_28, %c0_29] : memref<1x128x128xbf16, #tpu.memory_space<vmem>>, vector<1x128x128xbf16>
    %62 = vector.shape_cast %61 : vector<1x128x128xbf16> to vector<128x128xbf16>
    %63 = vector.shape_cast %60 : vector<128x128xbf16> to vector<1x128x128xbf16>
    tpu.vector_store %arg12[%c0_27, %c0_28, %c0_29], %63 {strides = array<i32>} : memref<1x128x128xbf16, #tpu.memory_space<vmem>>, vector<1x128x128xbf16>,
    %c0_30 = arith.constant 0 : index
    %c0_31 = arith.constant 0 : index
    %64 = vector.load %arg8[%c0_30, %c0_31] : memref<8x32xbf16, #tpu.memory_space<vmem>>, vector<8x32xbf16>
    %cst_32 = arith.constant dense<0.000000e+00> : vector<128x32xf32>
    %65 = tpu.matmul %53, %64, %cst_32 {dimension_numbers = #tpu.dot_dimension_numbers<[1], [0], [0], [1], [0, 0, 1, 1], [], []>} : vector<128x8xbf16>, vector<8x32xbf16>, vector<128x32xf32> -> vector<128x32xf32>
    %c0_33 = arith.constant 0 : index
    %c0_34 = arith.constant 0 : index
    %66 = vector.load %arg9[%c0_33, %c0_34] : memref<1x32xf32, #tpu.memory_space<vmem>>, vector<1x32xf32>
    %67 = vector.broadcast %66 : vector<1x32xf32> to vector<128x32xf32>
    %68 = arith.addf %65, %67 : vector<128x32xf32>
    %cst_35 = arith.constant 0.000000e+00 : f32
    %69 = vector.broadcast %cst_35 : f32 to vector<128x32xf32>
    %70 = arith.maximumf %68, %69 : vector<128x32xf32>
    %71 = arith.truncf %70 : vector<128x32xf32> to vector<128x32xbf16>
    %c0_36 = arith.constant 0 : index
    %c0_37 = arith.constant 0 : index
    %72 = vector.load %arg10[%c0_36, %c0_37] : memref<32x8xbf16, #tpu.memory_space<vmem>>, vector<32x8xbf16>
    %cst_38 = arith.constant dense<0.000000e+00> : vector<128x8xf32>
    %73 = tpu.matmul %71, %72, %cst_38 {dimension_numbers = #tpu.dot_dimension_numbers<[1], [0], [0], [1], [0, 0, 1, 1], [], []>} : vector<128x32xbf16>, vector<32x8xbf16>, vector<128x8xf32> -> vector<128x8xf32>
    %c0_39 = arith.constant 0 : index
    %c0_40 = arith.constant 0 : index
    %74 = vector.load %arg11[%c0_39, %c0_40] : memref<1x8xf32, #tpu.memory_space<vmem>>, vector<1x8xf32>
    %75 = vector.broadcast %74 : vector<1x8xf32> to vector<128x8xf32>
    %76 = arith.addf %73, %75 : vector<128x8xf32>
    %cst_41 = arith.constant dense<0.000000e+00> : vector<128xf32>
    %77 = vector.multi_reduction <add>, %3, %cst_41 [1] : vector<128x8xf32> to vector<128xf32>
    %78 = vector.shape_cast %77 : vector<128xf32> to vector<128x1xf32>
    %cst_42 = arith.constant 8.000000e+00 : f32
    %79 = vector.broadcast %cst_42 : f32 to vector<128x1xf32>
    %80 = arith.divf %78, %79 : vector<128x1xf32>
    %81 = vector.broadcast %80 : vector<128x1xf32> to vector<128x8xf32>
    %82 = arith.subf %3, %81 : vector<128x8xf32>
    %83 = arith.mulf %82, %82 : vector<128x8xf32>
    %cst_43 = arith.constant dense<0.000000e+00> : vector<128xf32>
    %84 = vector.multi_reduction <add>, %83, %cst_43 [1] : vector<128x8xf32> to vector<128xf32>
    %85 = vector.shape_cast %84 : vector<128xf32> to vector<128x1xf32>
    %cst_44 = arith.constant 8.000000e+00 : f32
    %86 = vector.broadcast %cst_44 : f32 to vector<128x1xf32>
    %87 = arith.divf %85, %86 : vector<128x1xf32>
    %cst_45 = arith.constant dense<0.000000e+00> : vector<128xf32>
    %88 = vector.multi_reduction <add>, %76, %cst_45 [1] : vector<128x8xf32> to vector<128xf32>
    %89 = vector.shape_cast %88 : vector<128xf32> to vector<128x1xf32>
    %cst_46 = arith.constant 8.000000e+00 : f32
    %90 = vector.broadcast %cst_46 : f32 to vector<128x1xf32>
    %91 = arith.divf %89, %90 : vector<128x1xf32>
    %92 = vector.broadcast %91 : vector<128x1xf32> to vector<128x8xf32>
    %93 = arith.subf %76, %92 : vector<128x8xf32>
    %94 = arith.mulf %93, %93 : vector<128x8xf32>
    %cst_47 = arith.constant dense<0.000000e+00> : vector<128xf32>
    %95 = vector.multi_reduction <add>, %94, %cst_47 [1] : vector<128x8xf32> to vector<128xf32>
    %96 = vector.shape_cast %95 : vector<128xf32> to vector<128x1xf32>
    %cst_48 = arith.constant 8.000000e+00 : f32
    %97 = vector.broadcast %cst_48 : f32 to vector<128x1xf32>
    %98 = arith.divf %96, %97 : vector<128x1xf32>
    %cst_49 = arith.constant 0.000000e+00 : f32
    %99 = vector.broadcast %cst_49 : f32 to vector<128x1xf32>
    %100 = arith.cmpf ogt, %98, %99 : vector<128x1xf32>
    %cst_50 = arith.constant 1.000000e+00 : f32
    %101 = vector.broadcast %cst_50 : f32 to vector<128x1xf32>
    %102 = arith.select %100, %98, %101 : vector<128x1xi1>, vector<128x1xf32>
    %103 = tpu.reciprocal %102 {approx = true} : vector<128x1xf32> -> vector<128x1xf32>
    %104 = vector.broadcast %91 : vector<128x1xf32> to vector<128x8xf32>
    %105 = arith.subf %76, %104 : vector<128x8xf32>
    %106 = vector.broadcast %103 : vector<128x1xf32> to vector<128x8xf32>
    %107 = arith.mulf %105, %106 : vector<128x8xf32>
    %108 = vector.broadcast %87 : vector<128x1xf32> to vector<128x8xf32>
    %109 = arith.mulf %107, %108 : vector<128x8xf32>
    %110 = vector.broadcast %80 : vector<128x1xf32> to vector<128x8xf32>
    %111 = arith.addf %109, %110 : vector<128x8xf32>
    %c0_51 = arith.constant 0 : index
    %c0_52 = arith.constant 0 : index
    %c0_53 = arith.constant 0 : index
    %112 = vector.load %arg13[%c0_51, %c0_52, %c0_53] : memref<1x128x8xf32, #tpu.memory_space<vmem>>, vector<1x128x8xf32>
    %113 = vector.shape_cast %112 : vector<1x128x8xf32> to vector<128x8xf32>
    %114 = vector.shape_cast %111 : vector<128x8xf32> to vector<1x128x8xf32>
    tpu.vector_store %arg13[%c0_51, %c0_52, %c0_53], %114 {strides = array<i32>} : memref<1x128x8xf32, #tpu.memory_space<vmem>>, vector<1x128x8xf32>,
    %115 = arith.index_cast %arg0 : i32 to index
    %116 = memref.load %arg1[%115] : memref<2xi32, #tpu.memory_space<smem>>
    %117 = tpu.iota {dimensions = array<i32: 0>} : vector<128x1xi32>
    %118 = vector.broadcast %116 : i32 to vector<128x1xi32>
    %119 = arith.cmpi slt, %117, %118 : vector<128x1xi32>
    %120 = arith.subf %111, %3 : vector<128x8xf32>
    %121 = arith.mulf %120, %120 : vector<128x8xf32>
    %cst_54 = arith.constant 0.000000e+00 : f32
    %122 = vector.shape_cast %119 : vector<128x1xi1> to vector<128x1xi1>
    %123 = vector.broadcast %122 : vector<128x1xi1> to vector<128x8xi1>
    %124 = vector.broadcast %cst_54 : f32 to vector<128x8xf32>
    %125 = arith.select %123, %121, %124 : vector<128x8xi1>, vector<128x8xf32>
    %126 = vector.shape_cast %125 : vector<128x8xf32> to vector<1x128x8xf32>
    %cst_55 = arith.constant dense<0.000000e+00> : vector<1xf32>
    %127 = vector.multi_reduction <add>, %126, %cst_55 [1, 2] : vector<1x128x8xf32> to vector<1xf32>
    %128 = vector.shape_cast %127 : vector<1xf32> to vector<1x1x1xf32>
    %129 = vector.extract %128[0, 0, 0] : f32 from vector<1x1x1xf32>
    %130 = vector.broadcast %129 : f32 to vector<1x1xf32>
    %c0_56 = arith.constant 0 : index
    %c0_57 = arith.constant 0 : index
    %c0_58 = arith.constant 0 : index
    %131 = vector.load %arg14[%c0_56, %c0_57, %c0_58] : memref<1x1x1xf32, #tpu.memory_space<vmem>>, vector<1x1x1xf32>
    %132 = vector.shape_cast %131 : vector<1x1x1xf32> to vector<1x1xf32>
    %133 = vector.shape_cast %130 : vector<1x1xf32> to vector<1x1x1xf32>
    tpu.vector_store %arg14[%c0_56, %c0_57, %c0_58], %133 {strides = array<i32>} : memref<1x1x1xf32, #tpu.memory_space<vmem>>, vector<1x1x1xf32>,
    return
  }
  func.func @transform_0(%arg0: i32, %arg1: memref<2xi32, #tpu.memory_space<smem>>) -> (i32, i32, i32) {
    %c0_i32 = arith.constant 0 : i32
    %c0_i32_0 = arith.constant 0 : i32
    %c0_i32_1 = arith.constant 0 : i32
    return %arg0, %c0_i32, %c0_i32_0 : i32, i32, i32
  }
  func.func @transform_1(%arg0: i32, %arg1: memref<2xi32, #tpu.memory_space<smem>>) -> (i32, i32, i32) {
    %c0_i32 = arith.constant 0 : i32
    %c0_i32_0 = arith.constant 0 : i32
    %c0_i32_1 = arith.constant 0 : i32
    return %arg0, %c0_i32, %c0_i32_0 : i32, i32, i32
  }
  func.func @transform_2(%arg0: i32, %arg1: memref<2xi32, #tpu.memory_space<smem>>) -> (i32, i32) {
    %c0_i32 = arith.constant 0 : i32
    %c0_i32_0 = arith.constant 0 : i32
    %c0_i32_1 = arith.constant 0 : i32
    return %c0_i32, %c0_i32_0 : i32, i32
  }
  func.func @transform_3(%arg0: i32, %arg1: memref<2xi32, #tpu.memory_space<smem>>) -> (i32, i32) {
    %c0_i32 = arith.constant 0 : i32
    %c0_i32_0 = arith.constant 0 : i32
    %c0_i32_1 = arith.constant 0 : i32
    return %c0_i32, %c0_i32_0 : i32, i32
  }
  func.func @transform_4(%arg0: i32, %arg1: memref<2xi32, #tpu.memory_space<smem>>) -> (i32, i32) {
    %c0_i32 = arith.constant 0 : i32
    %c0_i32_0 = arith.constant 0 : i32
    %c0_i32_1 = arith.constant 0 : i32
    return %c0_i32, %c0_i32_0 : i32, i32
  }
  func.func @transform_5(%arg0: i32, %arg1: memref<2xi32, #tpu.memory_space<smem>>) -> (i32, i32) {
    %c0_i32 = arith.constant 0 : i32
    %c0_i32_0 = arith.constant 0 : i32
    %c0_i32_1 = arith.constant 0 : i32
    return %c0_i32, %c0_i32_0 : i32, i32
  }
  func.func @transform_6(%arg0: i32, %arg1: memref<2xi32, #tpu.memory_space<smem>>) -> (i32, i32) {
    %c0_i32 = arith.constant 0 : i32
    %c0_i32_0 = arith.constant 0 : i32
    %c0_i32_1 = arith.constant 0 : i32
    return %c0_i32, %c0_i32_0 : i32, i32
  }
  func.func @transform_7(%arg0: i32, %arg1: memref<2xi32, #tpu.memory_space<smem>>) -> (i32, i32) {
    %c0_i32 = arith.constant 0 : i32
    %c0_i32_0 = arith.constant 0 : i32
    %c0_i32_1 = arith.constant 0 : i32
    return %c0_i32, %c0_i32_0 : i32, i32
  }
  func.func @transform_8(%arg0: i32, %arg1: memref<2xi32, #tpu.memory_space<smem>>) -> (i32, i32) {
    %c0_i32 = arith.constant 0 : i32
    %c0_i32_0 = arith.constant 0 : i32
    %c0_i32_1 = arith.constant 0 : i32
    return %c0_i32, %c0_i32_0 : i32, i32
  }
  func.func @transform_9(%arg0: i32, %arg1: memref<2xi32, #tpu.memory_space<smem>>) -> (i32, i32) {
    %c0_i32 = arith.constant 0 : i32
    %c0_i32_0 = arith.constant 0 : i32
    %c0_i32_1 = arith.constant 0 : i32
    return %c0_i32, %c0_i32_0 : i32, i32
  }
  func.func @transform_10(%arg0: i32, %arg1: memref<2xi32, #tpu.memory_space<smem>>) -> (i32, i32, i32) {
    %c0_i32 = arith.constant 0 : i32
    %c0_i32_0 = arith.constant 0 : i32
    %c0_i32_1 = arith.constant 0 : i32
    return %arg0, %c0_i32, %c0_i32_0 : i32, i32, i32
  }
  func.func @transform_11(%arg0: i32, %arg1: memref<2xi32, #tpu.memory_space<smem>>) -> (i32, i32, i32) {
    %c0_i32 = arith.constant 0 : i32
    %c0_i32_0 = arith.constant 0 : i32
    %c0_i32_1 = arith.constant 0 : i32
    return %arg0, %c0_i32, %c0_i32_0 : i32, i32, i32
  }
  func.func @transform_12(%arg0: i32, %arg1: memref<2xi32, #tpu.memory_space<smem>>) -> (i32, i32, i32) {
    %c0_i32 = arith.constant 0 : i32
    %c0_i32_0 = arith.constant 0 : i32
    %c0_i32_1 = arith.constant 0 : i32
    return %arg0, %c0_i32, %c0_i32_0 : i32, i32, i32
  }
}

</mosaic_0001>

<bundles_post_ra>
// kernel: tpu_custom_call.1
= control target key start
LH: loop header
LB: loop body
LE: loop exit
PB: predicated region body
PF: predicated region fallthrough
CT: control target
= control target key end

     0   :  { %s4382_s0 = inlined_call_operand.vmem [shape: s32[2], index: 0, kind: input, shape index: {}]   ;;  %s4383_s1 = inlined_call_operand.vmem [shape: f32[2,128,8], index: 1, kind: input, shape index: {}]   ;;  %s4384_s2 = inlined_call_operand.vmem [shape: f32[2,128,8], index: 2, kind: input, shape index: {}]   ;;  %s4385_s3 = inlined_call_operand.vmem [shape: bf16[8,32], index: 3, kind: input, shape index: {}]   ;;  %s4386_s4 = inlined_call_operand.vmem [shape: f32[1,32], index: 4, kind: input, shape index: {}]   ;;  %s4387_s5 = inlined_call_operand.vmem [shape: bf16[32,8], index: 5, kind: input, shape index: {}]   ;;  %s4388_s6 = inlined_call_operand.vmem [shape: f32[1,8], index: 6, kind: input, shape index: {}]   ;;  %s4389_s7 = inlined_call_operand.vmem [shape: bf16[8,32], index: 7, kind: input, shape index: {}]   ;;  %s4390_s8 = inlined_call_operand.vmem [shape: f32[1,32], index: 8, kind: input, shape index: {}]   ;;  %s4391_s9 = inlined_call_operand.vmem [shape: bf16[32,8], index: 9, kind: input, shape index: {}]   ;;  %s4392_s10 = inlined_call_operand.vmem [shape: f32[1,8], index: 10, kind: input, shape index: {}]   ;;  %s4393_s11 = inlined_call_operand.hbm [shape: bf16[2,128,128], index: 11, kind: output, shape index: {0}]   ;;  %s4394_s12 = inlined_call_operand.vmem [shape: f32[2,128,8], index: 12, kind: output, shape index: {1}]   ;;  %s4395_s13 = inlined_call_operand.vmem [shape: f32[2,1,1], index: 13, kind: output, shape index: {2}]  }
   0x1   :  { %4403 = sst [smem:[#allocation15_spill]] %s4383_s1  ;;  %s19_s27 = sshll.u32 %s4382_s0, 4  ;;  %s20_s27 = int_to_ptr.vmem [resolvable:$true] %s19_s27 }
   0x2   :  { %4404 = sst [smem:[#allocation16_spill]] %s4384_s2  ;;  %s3052_s28 = scalar_lea.vmem %s20_s27, 16 }
   0x3   :  { %p3053_p0 = scmp.ne.s32.totalorder %s20_s27, %s3052_s28  ;;  %p3057_p1 = scmp.lt.s32.totalorder %s20_s27, %s20_s27 }
   0x4   :  { %p3058_p2 = scmp.lt.s32.totalorder %s3052_s28, %s3052_s28 }
   0x6   :  { %p3059_p3 = por %p3058_p2, %p3057_p1 }
   0x8   :  { %p3060_p4 = pnand %p3059_p3, %p3053_p0 }
   0xa   :  { %3063 = shalt.err (!%p3060_p4)  }
   0xb   :  { %s3130_s29 = smov [#allocation3]  }
   0xc   :  { %22 = dma.vmem_to_smem %s20_s27, 16, %s3130_s29, [#allocation2] }
   0xd   :  { %3108 = dma.done.wait [#allocation2], 16 }
   0xe   :  { %3109 = vsyncadd [#allocation2], 4294967280 }
   0xf   :  { %24 = sfence }
  0x10   :  { %25 = vsyncpa [#allocation5], 0 }
  0x11   :  { %27 = vsyncpa [#allocation5 + $0x1], 0  ;;  %s3207_s30 = smov 0   ;;  %s3209_s14 = smov 0  }
  0x12   :  { %s3211_s0 = smov 0   ;;  %s3213_s15 = smov 0  }
  0x13 LB: > { %s3228_s16 = sadd.s32 4294967295, %s3128_s15   ;;  %s2538_s17 = sadd.s32 4294967294, %s3128_s15   ;;  %s3128_s15 = sphi %s3213_s15, %s4426_s15   ;;  %s3124_s0 = sphi %s3211_s0, %s4425_s0   ;;  %s3120_s14 = sphi %s3209_s14, %s4424_s14   ;;  %s3116_s30 = sphi %s3207_s30, %s4423_s30  }
  0x14   : > { %s3232_s18 = sadd.s32 1, %s3128_s15   ;;  %s260_s19 = sadd.s32 1, %s3124_s0 }
  0x15   : > { %s257_s20 = ssub.s32 %s3128_s15, %s3232_s18  ;;  %p270_p5 = scmp.ne.s32.totalorder %s3124_s0, %s3120_s14 }
  0x16   : > { %p258_p6 = scmp.eq.s32.totalorder %s257_s20, 0  ;;  %p271_p7 = scmp.eq.s32.totalorder %s3228_s16, 1 }
  0x17   : > { %p276_p8 = scmp.ne.s32.totalorder %s3120_s14, %s3116_s30  ;;  %p277_p9 = scmp.eq.s32.totalorder %s2538_s17, 1 }
  0x18   : > { %s3243_s21 = scalar_select %p258_p6, %s3124_s0, %s260_s19  }
  0x19   : > { %p3245_p10 = por %p271_p7, %p270_p5  ;;  %p3249_p11 = por %p277_p9, %p276_p8 }
  0x1a   : > { %p2541_p12 = scmp.ge.s32.totalorder %s3128_s15, 1  ;;  %p387_p13 = scmp.lt.s32.totalorder %s3128_s15, 3 }
  0x1c   : > { %p388_p0 = pnand %p2541_p12, %p387_p13 }
  0x1e   : > { %391 = sbr.rel (%p388_p0) target bundleno = 1816 (0x718), region = 60 }
  0x25   : > { %v663_v0 = vld [vmem:[%s4385_s3] sm:$0xf]  ;;  %vm695_vm0 = vcmask 1043456   ;;  %p442_p1 = scmp.lt.s32.totalorder %s3228_s16, 1  ;;  %s4407_s1 = sld [smem:[#allocation15_spill]]  ;;  %vm493_vm1 = vcmask 64512  }
  0x26   : > { %2863 = vmatprep.subr.msk.bf16.mxu0 %vm695_vm0, %v663_v0  ;;  %v697_v1 = vsel %vm695_vm0, %v663_v0, 0  ;;  %v2917_v26 = vld [vmem:[%s4387_s5] sm:$0xff]   ;;  %v2918_v27 = vld [vmem:[%s4387_s5 + $0x8] sm:$0xff]   ;;  %vm843_vm2 = vcmask 261120   ;;  %s4408_s2 = sld [smem:[#allocation16_spill]]  ;;  %s427_s29 = sand.u32 1, %s3120_s14  }
  0x27   : > { %2756 = vmatpush3.bf16.msra.mxu0 %v697_v1  ;;  %s3262_s26 = scalar_select %p442_p1, %s3228_s16, 1  ;;  %2773 = vmatprep.subr.bf16.mxu1 %v2917_v26  ;;  %v2549_v35 = vld [vmem:[%s4386_s4] ss:$0 sm:$0xff] }
  0x28   : > { %2774 = vmatpush3.bf16.msra.mxu1 %v2917_v26  ;;  %s2234_s28 = sld [smem:[#allocation3 + %s3228_s16]] }
  0x29   : > { %s3265_s27 = sshll.u32 %s3262_s26, 7  ;;  %2775 = vmatprep.subr.bf16.mxu1 %v2918_v27 }
  0x2a   : > { %s4154_s25 = scalar_lea.vmem %s4394_s12, %s3265_s27 }
  0x2b   : > { %s3271_s17 = scalar_lea.vmem %s4407_s1, %s3265_s27 }
  0x2c   : > { %v3274_v2 = vld [vmem:[%s3271_s17] sm:$0xff]  ;;  %v3277_v3 = vld [vmem:[%s3271_s17 + $0x8] sm:$0xff]  ;;  %v3280_v4 = vld [vmem:[%s3271_s17 + $0x10] sm:$0xff]  ;;  %2776 = vmatpush3.bf16.msra.mxu1 %v2918_v27  ;;  %s3760_s24 = scalar_lea.vmem %s4408_s2, %s3265_s27  ;;  %s2653_s27 = sshll.u32 %s3228_s16, 10 }
  0x2d   : > { %v655_v5 = vpack.c.bf16 %v3277_v3, %v3274_v2  ;;  %v3285_v6 = vld [vmem:[%s3271_s17 + $0x18] sm:$0xff]  ;;  %v3288_v7 = vld [vmem:[%s3271_s17 + $0x20] sm:$0xff]  ;;  %v3291_v8 = vld [vmem:[%s3271_s17 + $0x28] sm:$0xff]  ;;  %v497_v28 = vsel %vm493_vm1, %v3277_v3, 0.0  ;;  %v494_v29 = vsel %vm493_vm1, %v3274_v2, 0.0  ;;  %v500_v31 = vsel %vm493_vm1, %v3280_v4, 0.0  ;;  %s4331_s20 = scalar_lea.hbm %s4393_s11, %s2653_s27 }
  0x2e   : > { %v656_v9 = vpack.c.bf16 %v3285_v6, %v3280_v4  ;;  %v657_v10 = vpack.c.bf16 %v3291_v8, %v3288_v7  ;;  %v3301_v11 = vld [vmem:[%s3271_s17 + $0x30] sm:$0xff]  ;;  %v3304_v12 = vld [vmem:[%s3271_s17 + $0x38] sm:$0xff]  ;;  %v3307_v13 = vld [vmem:[%s3271_s17 + $0x40] sm:$0xff]  ;;  %498 = vadd.xlane.f32.xlu1 %v497_v28  ;;  %495 = vadd.xlane.f32.xlu0 %v494_v29  ;;  %v503_v30 = vsel %vm493_vm1, %v3285_v6, 0.0  ;;  %v509_v32 = vsel %vm493_vm1, %v3291_v8, 0.0  ;;  %s3131_s16 = smov [#allocation4]  }
  0x2f   : > { %2757 = vmatprep.mubr.msk.bf16.mxu0 %vm493_vm1, %v655_v5  ;;  %v3310_v14 = vld [vmem:[%s3271_s17 + $0x48] sm:$0xff]  ;;  %v658_v15 = vpack.c.bf16 %v3304_v12, %v3301_v11  ;;  %v3319_v17 = vld [vmem:[%s3271_s17 + $0x50] sm:$0xff]  ;;  %v3322_v18 = vld [vmem:[%s3271_s17 + $0x58] sm:$0xff]  ;;  %v506_v33 = vsel %vm493_vm1, %v3288_v7, 0.0  ;;  %v515_v34 = vsel %vm493_vm1, %v3304_v12, 0.0 }
  0x30   : > { %2758 = vmatmul.mubr.msk.bf16.vlgmr.msra.gmra.mrb[0].mxu0 %vm493_vm1, %v656_v9  ;;  %v659_v16 = vpack.c.bf16 %v3310_v14, %v3307_v13  ;;  %v3325_v19 = vld [vmem:[%s3271_s17 + $0x60] sm:$0xff]  ;;  %v3328_v20 = vld [vmem:[%s3271_s17 + $0x68] sm:$0xff]  ;;  %v660_v21 = vpack.c.bf16 %v3322_v18, %v3319_v17  ;;  %v3337_v23 = vld [vmem:[%s3271_s17 + $0x70] sm:$0xff] }
  0x31   : > { %2761 = vmatprep.mubr.msk.bf16.mxu0 %vm493_vm1, %v657_v10  ;;  %v661_v22 = vpack.c.bf16 %v3328_v20, %v3325_v19  ;;  %v3340_v24 = vld [vmem:[%s3271_s17 + $0x78] sm:$0xff]  ;;  %s2542_s17 = sshll.u32 %s427_s29, 6 }
  0x32   : > { %v662_v25 = vpack.c.bf16 %v3340_v24, %v3337_v23  ;;  %504 = vadd.xlane.f32.xlu1 %v503_v30  ;;  %501 = vadd.xlane.f32.xlu0 %v500_v31  ;;  %s3791_s19 = scalar_lea.vmem [#allocation4], %s2542_s17 }
  0x36   : > { %510 = vadd.xlane.f32.xlu1 %v509_v32  ;;  %507 = vadd.xlane.f32.xlu0 %v506_v33 }
  0x38   : > { %2762 = vmatmul.mubr.msk.bf16.gmra.mrb[4].mxu0 %vm493_vm1, %v658_v15 }
  0x39   : > { %2765 = vmatprep.mubr.msk.bf16.mxu0 %vm493_vm1, %v659_v16 }
  0x3a   : > { %516 = vadd.xlane.f32.xlu1 %v515_v34 }
  0x40   : > { %2766 = vmatmul.mubr.msk.bf16.gmra.mrb[8].mxu0 %vm493_vm1, %v660_v21 }
  0x41   : > { %2769 = vmatprep.mubr.msk.bf16.mxu0 %vm493_vm1, %v661_v22 }
  0x48   : > { %2770 = vmatmul.mubr.msk.bf16.gmra.mrb[12].mxu0 %vm493_vm1, %v662_v25 }
 0x103   : > { %v2759_v36 = vpop.f32.mrb[0].mxu0 }
 0x104   : > { %v742_v37 = vadd.f32 %v2759_v36, %v2549_v35  ;;  %v733_v38 = vpop.f32.mrb[1].mxu0 }
 0x105   : > { %v734_v39 = vadd.f32 %v2549_v35, %v733_v38  ;;  %v2760_v40 = vpop.f32.mrb[2].mxu0 }
 0x106   : > { %v745_v41 = vadd.f32 %v2760_v40, %v2549_v35  ;;  %v736_v42 = vpop.f32.mrb[3].mxu0  ;;  %v798_v44 = vmax.f32 %v742_v37, 0.0 }
 0x107   : > { %v737_v43 = vadd.f32 %v2549_v35, %v736_v42  ;;  %v796_v46 = vmax.f32 %v734_v39, 0.0 }
 0x108   : > { %v799_v45 = vmax.f32 %v745_v41, 0.0 }
 0x109   : > { %v797_v47 = vmax.f32 %v737_v43, 0.0 }
 0x10a   : > { %v813_v48 = vpack.c.bf16 %v799_v45, %v798_v44  ;;  %v512_v45 = vsel %vm493_vm1, %v3301_v11, 0.0 }
 0x10b   : > { %v2763_v49 = vpop.f32.mrb[4].mxu0  ;;  %v812_v50 = vpack.c.bf16 %v797_v47, %v796_v46  ;;  %513 = vadd.xlane.f32.xlu0 %v512_v45  ;;  %v2558_v46 = vld [vmem:[%s4388_s6] ss:$0 sm:$0xff]  ;;  %v496_v45 = vpop.xlane.xlu0 %495 }
 0x10c   : > { %v758_v51 = vadd.f32 %v2763_v49, %v2549_v35  ;;  %v749_v52 = vpop.f32.mrb[5].mxu0 }
 0x10d   : > { %v750_v53 = vadd.f32 %v2549_v35, %v749_v52  ;;  %v2764_v54 = vpop.f32.mrb[6].mxu0  ;;  %2777 = vmatprep.mubr.msk.bf16.mxu1 %vm843_vm2, %v812_v50 }
 0x10e   : > { %v802_v55 = vmax.f32 %v758_v51, 0.0  ;;  %v761_v56 = vadd.f32 %v2764_v54, %v2549_v35  ;;  %v752_v57 = vpop.f32.mrb[7].mxu0  ;;  %2778 = vmatmul.mubr.msk.bf16.vlgmr.msra.gmra.mrb[0].mxu1 %vm843_vm2, %v813_v48 }
 0x10f   : > { %v800_v58 = vmax.f32 %v750_v53, 0.0  ;;  %v753_v59 = vadd.f32 %v2549_v35, %v752_v57 }
 0x110   : > { %v803_v60 = vmax.f32 %v761_v56, 0.0 }
 0x111   : > { %v801_v61 = vmax.f32 %v753_v59, 0.0 }
 0x112   : > { %v815_v62 = vpack.c.bf16 %v803_v60, %v802_v55 }
 0x113   : > { %v814_v63 = vpack.c.bf16 %v801_v61, %v800_v58  ;;  %v2767_v0 = vpop.f32.mrb[8].mxu0 }
 0x114   : > { %v774_v1 = vadd.f32 %v2767_v0, %v2549_v35  ;;  %v765_v5 = vpop.f32.mrb[9].mxu0 }
 0x115   : > { %v766_v9 = vadd.f32 %v2549_v35, %v765_v5  ;;  %v2768_v10 = vpop.f32.mrb[10].mxu0  ;;  %2781 = vmatprep.mubr.msk.bf16.mxu1 %vm843_vm2, %v814_v63 }
 0x116   : > { %v806_v15 = vmax.f32 %v774_v1, 0.0  ;;  %v777_v16 = vadd.f32 %v2768_v10, %v2549_v35  ;;  %v768_v21 = vpop.f32.mrb[11].mxu0  ;;  %2782 = vmatmul.mubr.msk.bf16.gmra.mrb[4].mxu1 %vm843_vm2, %v815_v62 }
 0x117   : > { %v804_v22 = vmax.f32 %v766_v9, 0.0  ;;  %v769_v25 = vadd.f32 %v2549_v35, %v768_v21 }
 0x118   : > { %v807_v26 = vmax.f32 %v777_v16, 0.0 }
 0x119   : > { %v805_v27 = vmax.f32 %v769_v25, 0.0 }
 0x11a   : > { %v817_v28 = vpack.c.bf16 %v807_v26, %v806_v15 }
 0x11b   : > { %v816_v29 = vpack.c.bf16 %v805_v27, %v804_v22  ;;  %v2771_v30 = vpop.f32.mrb[12].mxu0 }
 0x11c   : > { %v790_v31 = vadd.f32 %v2771_v30, %v2549_v35  ;;  %v781_v32 = vpop.f32.mrb[13].mxu0 }
 0x11d   : > { %v782_v33 = vadd.f32 %v2549_v35, %v781_v32  ;;  %v2772_v34 = vpop.f32.mrb[14].mxu0  ;;  %2785 = vmatprep.mubr.msk.bf16.mxu1 %vm843_vm2, %v816_v29 }
 0x11e   : > { %v810_v36 = vmax.f32 %v790_v31, 0.0  ;;  %v793_v37 = vadd.f32 %v2772_v34, %v2549_v35  ;;  %v784_v38 = vpop.f32.mrb[15].mxu0  ;;  %2786 = vmatmul.mubr.msk.bf16.gmra.mrb[8].mxu1 %vm843_vm2, %v817_v28 }
 0x11f   : > { %v808_v39 = vmax.f32 %v782_v33, 0.0  ;;  %v785_v40 = vadd.f32 %v2549_v35, %v784_v38 }
 0x120   : > { %v811_v41 = vmax.f32 %v793_v37, 0.0 }
 0x121   : > { %v809_v42 = vmax.f32 %v785_v40, 0.0 }
 0x122   : > { %v819_v43 = vpack.c.bf16 %v811_v41, %v810_v36 }
 0x123   : > { %v818_v44 = vpack.c.bf16 %v809_v42, %v808_v39 }
 0x125   : > { %2789 = vmatprep.mubr.msk.bf16.mxu1 %vm843_vm2, %v818_v44 }
 0x126   : > { %2790 = vmatmul.mubr.msk.bf16.gmra.mrb[12].mxu1 %vm843_vm2, %v819_v43 }
 0x1e1   : > { %v2779_v47 = vpop.f32.mrb[0].mxu1 }
 0x1e2   : > { %v3381_v48 = vadd.f32 %v2779_v47, %v2558_v46  ;;  %v902_v35 = vpop.f32.mrb[1].mxu1  ;;  %v499_v47 = vpop.xlane.xlu1 %498 }
 0x1e3   : > { %v3383_v49 = vadd.f32 %v2558_v46, %v902_v35  ;;  %v2780_v50 = vpop.f32.mrb[2].mxu1 }
 0x1e4   : > { %v3385_v51 = vadd.f32 %v2780_v50, %v2558_v46  ;;  %v905_v52 = vpop.f32.mrb[3].mxu1  ;;  %v971_v53 = vsel %vm493_vm1, %v3381_v48, 0.0 }
 0x1e5   : > { %v3389_v54 = vadd.f32 %v2558_v46, %v905_v52  ;;  %972 = vadd.xlane.f32.xlu1 %v971_v53  ;;  %v965_v55 = vsel %vm493_vm1, %v3383_v49, 0.0  ;;  %v518_v52 = vsel %vm493_vm1, %v3307_v13, 0.0  ;;  %v502_v53 = vpop.xlane.xlu0 %501 }
 0x1e6   : > { %966 = vadd.xlane.f32.xlu0 %v965_v55  ;;  %v974_v56 = vsel %vm493_vm1, %v3385_v51, 0.0  ;;  %v505_v55 = vpop.xlane.xlu1 %504 }
 0x1e7   : > { %v968_v58 = vsel %vm493_vm1, %v3389_v54, 0.0 }
 0x1e9   : > { %975 = vadd.xlane.f32.xlu1 %v974_v56  ;;  %v2783_v57 = vpop.f32.mrb[4].mxu1  ;;  %v524_v56 = vsel %vm493_vm1, %v3319_v17, 0.0 }
 0x1ea   : > { %v3397_v59 = vadd.f32 %v2783_v57, %v2558_v46  ;;  %v918_v60 = vpop.f32.mrb[5].mxu1  ;;  %969 = vadd.xlane.f32.xlu0 %v968_v58  ;;  %v3451_v57 = vmul.f32 0.125, %v496_v45  ;;  %v527_v58 = vsel %vm493_vm1, %v3322_v18, 0.0 }
 0x1eb   : > { %v2784_v61 = vpop.f32.mrb[6].mxu1  ;;  %v3403_v1 = vadd.f32 %v2558_v46, %v918_v60  ;;  %v3455_v60 = vmul.f32 0.125, %v499_v47 }
 0x1ec   : > { %v3399_v62 = vadd.f32 %v2784_v61, %v2558_v46  ;;  %v921_v63 = vpop.f32.mrb[7].mxu1  ;;  %v983_v0 = vsel %vm493_vm1, %v3397_v59, 0.0  ;;  %v508_v61 = vpop.xlane.xlu0 %507 }
 0x1ed   : > { %v3405_v5 = vadd.f32 %v2558_v46, %v921_v63  ;;  %v977_v15 = vsel %vm493_vm1, %v3403_v1, 0.0  ;;  %v530_v63 = vsel %vm493_vm1, %v3325_v19, 0.0 }
 0x1ee   : > { %984 = vadd.xlane.f32.xlu0 %v983_v0  ;;  %v986_v9 = vsel %vm493_vm1, %v3399_v62, 0.0  ;;  %v3459_v0 = vmul.f32 0.125, %v502_v53 }
 0x1ef   : > { %987 = vadd.xlane.f32.xlu1 %v986_v9  ;;  %v980_v22 = vsel %vm493_vm1, %v3405_v5, 0.0  ;;  %v511_v9 = vpop.xlane.xlu1 %510 }
 0x1f1   : > { %v2787_v10 = vpop.f32.mrb[8].mxu1 }
 0x1f2   : > { %v3411_v16 = vadd.f32 %v2787_v10, %v2558_v46  ;;  %v934_v21 = vpop.f32.mrb[9].mxu1  ;;  %978 = vadd.xlane.f32.xlu0 %v977_v15  ;;  %v559_v10 = vsub.f32 %v3274_v2, %v3451_v57  ;;  %v533_v15 = vsel %vm493_vm1, %v3328_v20, 0.0  ;;  %v539_v2 = vsel %vm493_vm1, %v3340_v24, 0.0 }
 0x1f3   : > { %v2788_v25 = vpop.f32.mrb[10].mxu1  ;;  %981 = vadd.xlane.f32.xlu1 %v980_v22  ;;  %v3419_v29 = vadd.f32 %v2558_v46, %v934_v21  ;;  %v3465_v21 = vmul.f32 0.125, %v505_v55  ;;  %v560_v22 = vsub.f32 %v3277_v3, %v3455_v60 }
 0x1f4   : > { %v3415_v26 = vadd.f32 %v2788_v25, %v2558_v46  ;;  %v937_v27 = vpop.f32.mrb[11].mxu1  ;;  %v995_v28 = vsel %vm493_vm1, %v3411_v16, 0.0  ;;  %v536_v25 = vsel %vm493_vm1, %v3337_v23, 0.0 }
 0x1f5   : > { %v3421_v30 = vadd.f32 %v2558_v46, %v937_v27  ;;  %v989_v33 = vsel %vm493_vm1, %v3419_v29, 0.0  ;;  %v575_v27 = vmul.f32 %v559_v10, %v559_v10  ;;  %v562_v3 = vsub.f32 %v3285_v6, %v3465_v21 }
 0x1f6   : > { %996 = vadd.xlane.f32.xlu0 %v995_v28  ;;  %v998_v31 = vsel %vm493_vm1, %v3415_v26, 0.0  ;;  %v3471_v28 = vmul.f32 0.125, %v508_v61 }
 0x1f7   : > { %999 = vadd.xlane.f32.xlu1 %v998_v31  ;;  %v992_v37 = vsel %vm493_vm1, %v3421_v30, 0.0  ;;  %v561_v31 = vsub.f32 %v3280_v4, %v3459_v0  ;;  %v578_v47 = vmul.f32 %v562_v3, %v562_v3 }
 0x1f8   : > { %v563_v4 = vsub.f32 %v3288_v7, %v3471_v28 }
 0x1f9   : > { %v2791_v32 = vpop.f32.mrb[12].mxu1 }
 0x1fa   : > { %v3427_v34 = vadd.f32 %v2791_v32, %v2558_v46  ;;  %v950_v36 = vpop.f32.mrb[13].mxu1  ;;  %990 = vadd.xlane.f32.xlu0 %v989_v33  ;;  %v3477_v32 = vmul.f32 0.125, %v511_v9  ;;  %v576_v33 = vmul.f32 %v560_v22, %v560_v22 }
 0x1fb   : > { %v2792_v38 = vpop.f32.mrb[14].mxu1  ;;  %993 = vadd.xlane.f32.xlu1 %v992_v37  ;;  %v3435_v42 = vadd.f32 %v2558_v46, %v950_v36  ;;  %v514_v36 = vpop.xlane.xlu0 %513 }
 0x1fc   : > { %v3431_v39 = vadd.f32 %v2792_v38, %v2558_v46  ;;  %v953_v40 = vpop.f32.mrb[15].mxu1  ;;  %v1007_v41 = vsel %vm493_vm1, %v3427_v34, 0.0  ;;  %v517_v37 = vpop.xlane.xlu1 %516  ;;  %v591_v38 = vsel %vm493_vm1, %v575_v27, 0.0  ;;  %v564_v6 = vsub.f32 %v3291_v8, %v3477_v32 }
 0x1fd   : > { %v3437_v43 = vadd.f32 %v2558_v46, %v953_v40  ;;  %v1001_v35 = vsel %vm493_vm1, %v3435_v42, 0.0  ;;  %v521_v46 = vsel %vm493_vm1, %v3310_v14, 0.0  ;;  %v577_v40 = vmul.f32 %v561_v31, %v561_v31 }
 0x1fe   : > { %1008 = vadd.xlane.f32.xlu0 %v1007_v41  ;;  %v1010_v44 = vsel %vm493_vm1, %v3431_v39, 0.0  ;;  %v3482_v41 = vmul.f32 0.125, %v514_v36  ;;  %v3487_v45 = vmul.f32 0.125, %v517_v37  ;;  %v580_v53 = vmul.f32 %v564_v6, %v564_v6 }
 0x1ff   : > { %1011 = vadd.xlane.f32.xlu1 %v1010_v44  ;;  %v1004_v50 = vsel %vm493_vm1, %v3437_v43, 0.0  ;;  %v594_v44 = vsel %vm493_vm1, %v576_v33, 0.0 }
 0x200   : > { %v566_v7 = vsub.f32 %v3304_v12, %v3487_v45  ;;  %v606_v8 = vsel %vm493_vm1, %v580_v53, 0.0  ;;  %v3504_v12 = vld [vmem:[%s4389_s7] sm:$0xf] }
 0x201   : > { %2872 = vmatprep.subr.msk.bf16.mxu1 %vm695_vm0, %v3504_v12 }
 0x202   : > { %1002 = vadd.xlane.f32.xlu0 %v1001_v35  ;;  %v597_v35 = vsel %vm493_vm1, %v577_v40, 0.0 }
 0x203   : > { %1005 = vadd.xlane.f32.xlu1 %v1004_v50  ;;  %v579_v50 = vmul.f32 %v563_v4, %v563_v4 }
 0x205   : > { %v603_v55 = vsel %vm493_vm1, %v579_v50, 0.0 }
 0x206   : > { %519 = vadd.xlane.f32.xlu0 %v518_v52  ;;  %v565_v52 = vsub.f32 %v3301_v11, %v3482_v41 }
 0x207   : > { %522 = vadd.xlane.f32.xlu1 %v521_v46  ;;  %v600_v46 = vsel %vm493_vm1, %v578_v47, 0.0 }
 0x20a   : > { %525 = vadd.xlane.f32.xlu0 %v524_v56  ;;  %v581_v56 = vmul.f32 %v565_v52, %v565_v52 }
 0x20b   : > { %528 = vadd.xlane.f32.xlu1 %v527_v58  ;;  %v582_v58 = vmul.f32 %v566_v7, %v566_v7 }
 0x20c   : > { %v609_v61 = vsel %vm493_vm1, %v581_v56, 0.0 }
 0x20d   : > { %v612_v11 = vsel %vm493_vm1, %v582_v58, 0.0 }
 0x20e   : > { %531 = vadd.xlane.f32.xlu0 %v530_v63 }
 0x20f   : > { %534 = vadd.xlane.f32.xlu1 %v533_v15 }
 0x212   : > { %537 = vadd.xlane.f32.xlu0 %v536_v25 }
 0x213   : > { %540 = vadd.xlane.f32.xlu1 %v539_v2 }
 0x216   : > { %592 = vadd.xlane.f32.xlu0 %v591_v38 }
 0x217   : > { %595 = vadd.xlane.f32.xlu1 %v594_v44 }
 0x21a   : > { %598 = vadd.xlane.f32.xlu0 %v597_v35 }
 0x21b   : > { %601 = vadd.xlane.f32.xlu1 %v600_v46 }
 0x21e   : > { %604 = vadd.xlane.f32.xlu0 %v603_v55 }
 0x21f   : > { %607 = vadd.xlane.f32.xlu1 %v606_v8 }
 0x222   : > { %610 = vadd.xlane.f32.xlu0 %v609_v61 }
 0x223   : > { %613 = vadd.xlane.f32.xlu1 %v612_v11 }
 0x272   : > { %v973_v63 = vpop.xlane.xlu1 %972 }
 0x273   : > { %v1015_v9 = vmul.f32 0.125, %v973_v63  ;;  %v967_v10 = vpop.xlane.xlu0 %966 }
 0x274   : > { %v1013_v15 = vmul.f32 0.125, %v967_v10 }
 0x275   : > { %v3509_v22 = vsub.f32 %v3381_v48, %v1015_v9 }
 0x276   : > { %v3512_v25 = vsub.f32 %v3383_v49, %v1013_v15  ;;  %v976_v27 = vpop.xlane.xlu1 %975 }
 0x277   : > { %v1016_v31 = vmul.f32 0.125, %v976_v27  ;;  %v970_v2 = vpop.xlane.xlu0 %969  ;;  %v1047_v33 = vmul.f32 %v3509_v22, %v3509_v22 }
 0x278   : > { %v1014_v3 = vmul.f32 0.125, %v970_v2  ;;  %v1045_v38 = vmul.f32 %v3512_v25, %v3512_v25 }
 0x279   : > { %v3517_v36 = vsub.f32 %v3385_v51, %v1016_v31  ;;  %v1067_v37 = vsel %vm493_vm1, %v1047_v33, 0.0 }
 0x27a   : > { %v3523_v48 = vsub.f32 %v3389_v54, %v1014_v3  ;;  %1068 = vadd.xlane.f32.xlu0 %v1067_v37  ;;  %v1061_v51 = vsel %vm493_vm1, %v1045_v38, 0.0 }
 0x27b   : > { %v985_v49 = vpop.xlane.xlu0 %984  ;;  %v1048_v40 = vmul.f32 %v3517_v36, %v3517_v36 }
 0x27c   : > { %v1019_v4 = vmul.f32 0.125, %v985_v49  ;;  %v988_v44 = vpop.xlane.xlu1 %987  ;;  %v1046_v35 = vmul.f32 %v3523_v48, %v3523_v48 }
 0x27d   : > { %v1020_v47 = vmul.f32 0.125, %v988_v44  ;;  %v1070_v6 = vsel %vm493_vm1, %v1048_v40, 0.0 }
 0x27e   : > { %v3532_v50 = vsub.f32 %v3397_v59, %v1019_v4  ;;  %1071 = vadd.xlane.f32.xlu1 %v1070_v6  ;;  %1062 = vadd.xlane.f32.xlu0 %v1061_v51  ;;  %v1064_v56 = vsel %vm493_vm1, %v1046_v35, 0.0 }
 0x27f   : > { %v3535_v54 = vsub.f32 %v3399_v62, %v1020_v47  ;;  %v979_v52 = vpop.xlane.xlu0 %978 }
 0x280   : > { %v1017_v46 = vmul.f32 0.125, %v979_v52  ;;  %v982_v53 = vpop.xlane.xlu1 %981  ;;  %v1051_v7 = vmul.f32 %v3532_v50, %v3532_v50 }
 0x281   : > { %v1018_v55 = vmul.f32 0.125, %v982_v53  ;;  %v1052_v8 = vmul.f32 %v3535_v54, %v3535_v54 }
 0x282   : > { %v3543_v59 = vsub.f32 %v3403_v1, %v1017_v46  ;;  %1065 = vadd.xlane.f32.xlu1 %v1064_v56  ;;  %v1079_v58 = vsel %vm493_vm1, %v1051_v7, 0.0 }
 0x283   : > { %v3547_v62 = vsub.f32 %v3405_v5, %v1018_v55  ;;  %1080 = vadd.xlane.f32.xlu0 %v1079_v58  ;;  %v997_v61 = vpop.xlane.xlu0 %996  ;;  %v1082_v15 = vsel %vm493_vm1, %v1052_v8, 0.0 }
 0x284   : > { %v1023_v11 = vmul.f32 0.125, %v997_v61  ;;  %v1000_v63 = vpop.xlane.xlu1 %999  ;;  %v1049_v9 = vmul.f32 %v3543_v59, %v3543_v59 }
 0x285   : > { %v1024_v10 = vmul.f32 0.125, %v1000_v63  ;;  %v1050_v1 = vmul.f32 %v3547_v62, %v3547_v62 }
 0x286   : > { %v3555_v27 = vsub.f32 %v3411_v16, %v1023_v11  ;;  %1083 = vadd.xlane.f32.xlu1 %v1082_v15  ;;  %v1073_v5 = vsel %vm493_vm1, %v1049_v9, 0.0 }
 0x287   : > { %v3559_v31 = vsub.f32 %v3415_v26, %v1024_v10  ;;  %1074 = vadd.xlane.f32.xlu0 %v1073_v5  ;;  %v991_v2 = vpop.xlane.xlu0 %990  ;;  %v1076_v49 = vsel %vm493_vm1, %v1050_v1, 0.0 }
 0x288   : > { %v1021_v33 = vmul.f32 0.125, %v991_v2  ;;  %v994_v3 = vpop.xlane.xlu1 %993  ;;  %v1055_v37 = vmul.f32 %v3555_v27, %v3555_v27 }
 0x289   : > { %v1022_v38 = vmul.f32 0.125, %v994_v3  ;;  %v1056_v16 = vmul.f32 %v3559_v31, %v3559_v31 }
 0x28a   : > { %v3567_v40 = vsub.f32 %v3419_v29, %v1021_v33  ;;  %1077 = vadd.xlane.f32.xlu1 %v1076_v49  ;;  %v1091_v26 = vsel %vm493_vm1, %v1055_v37, 0.0 }
 0x28b   : > { %v3571_v4 = vsub.f32 %v3421_v30, %v1022_v38  ;;  %1092 = vadd.xlane.f32.xlu0 %v1091_v26  ;;  %v1009_v44 = vpop.xlane.xlu0 %1008  ;;  %v1094_v52 = vsel %vm493_vm1, %v1056_v16, 0.0 }
 0x28c   : > { %v1027_v47 = vmul.f32 0.125, %v1009_v44  ;;  %v1012_v6 = vpop.xlane.xlu1 %1011  ;;  %v1053_v51 = vmul.f32 %v3567_v40, %v3567_v40 }
 0x28d   : > { %v1028_v35 = vmul.f32 0.125, %v1012_v6  ;;  %v1054_v29 = vmul.f32 %v3571_v4, %v3571_v4 }
 0x28e   : > { %v3579_v46 = vsub.f32 %v3427_v34, %v1027_v47  ;;  %1095 = vadd.xlane.f32.xlu1 %v1094_v52  ;;  %v1085_v30 = vsel %vm493_vm1, %v1053_v51, 0.0  ;;  %v1535_v52 = vsel %vm695_vm0, %v3504_v12, 0 }
 0x28f   : > { %v3583_v53 = vsub.f32 %v3431_v39, %v1028_v35  ;;  %1086 = vadd.xlane.f32.xlu0 %v1085_v30  ;;  %v1003_v7 = vpop.xlane.xlu0 %1002  ;;  %v1088_v61 = vsel %vm493_vm1, %v1054_v29, 0.0  ;;  %2826 = vmatpush3.bf16.msra.mxu1 %v1535_v52 }
 0x290   : > { %v1025_v55 = vmul.f32 0.125, %v1003_v7  ;;  %v1006_v56 = vpop.xlane.xlu1 %1005  ;;  %v1059_v8 = vmul.f32 %v3579_v46, %v3579_v46 }
 0x291   : > { %v1026_v58 = vmul.f32 0.125, %v1006_v56  ;;  %v1060_v34 = vmul.f32 %v3583_v53, %v3583_v53 }
 0x292   : > { %v3591_v11 = vsub.f32 %v3435_v42, %v1025_v55  ;;  %1089 = vadd.xlane.f32.xlu1 %v1088_v61  ;;  %v1103_v39 = vsel %vm493_vm1, %v1059_v8, 0.0 }
 0x293   : > { %v3595_v63 = vsub.f32 %v3437_v43, %v1026_v58  ;;  %1104 = vadd.xlane.f32.xlu0 %v1103_v39  ;;  %v520_v9 = vpop.xlane.xlu0 %519  ;;  %v1106_v2 = vsel %vm493_vm1, %v1060_v34, 0.0 }
 0x294   : > { %v3597_v10 = vmul.f32 0.125, %v520_v9  ;;  %v523_v15 = vpop.xlane.xlu1 %522  ;;  %v1057_v1 = vmul.f32 %v3591_v11, %v3591_v11 }
 0x295   : > { %v3601_v5 = vmul.f32 0.125, %v523_v15  ;;  %v1058_v42 = vmul.f32 %v3595_v63, %v3595_v63 }
 0x296   : > { %1107 = vadd.xlane.f32.xlu1 %v1106_v2  ;;  %v1097_v33 = vsel %vm493_vm1, %v1057_v1, 0.0  ;;  %v567_v43 = vsub.f32 %v3307_v13, %v3597_v10 }
 0x297   : > { %1098 = vadd.xlane.f32.xlu0 %v1097_v33  ;;  %v526_v3 = vpop.xlane.xlu0 %525  ;;  %v568_v37 = vsub.f32 %v3310_v14, %v3601_v5  ;;  %v1100_v44 = vsel %vm493_vm1, %v1058_v42, 0.0 }
 0x298   : > { %v3611_v38 = vmul.f32 0.125, %v526_v3  ;;  %v529_v49 = vpop.xlane.xlu1 %528  ;;  %v583_v16 = vmul.f32 %v567_v43, %v567_v43 }
 0x299   : > { %v3613_v26 = vmul.f32 0.125, %v529_v49  ;;  %v584_v47 = vmul.f32 %v568_v37, %v568_v37 }
 0x29a   : > { %1101 = vadd.xlane.f32.xlu1 %v1100_v44  ;;  %v615_v6 = vsel %vm493_vm1, %v583_v16, 0.0  ;;  %v569_v13 = vsub.f32 %v3319_v17, %v3611_v38 }
 0x29b   : > { %616 = vadd.xlane.f32.xlu0 %v615_v6  ;;  %v532_v51 = vpop.xlane.xlu0 %531  ;;  %v618_v35 = vsel %vm493_vm1, %v584_v47, 0.0  ;;  %v570_v14 = vsub.f32 %v3322_v18, %v3613_v26 }
 0x29c   : > { %v3624_v29 = vmul.f32 0.125, %v532_v51  ;;  %v535_v30 = vpop.xlane.xlu1 %534  ;;  %v585_v7 = vmul.f32 %v569_v13, %v569_v13 }
 0x29d   : > { %v3626_v55 = vmul.f32 0.125, %v535_v30  ;;  %v586_v56 = vmul.f32 %v570_v14, %v570_v14 }
 0x29e   : > { %619 = vadd.xlane.f32.xlu1 %v618_v35  ;;  %v621_v17 = vsel %vm493_vm1, %v585_v7, 0.0  ;;  %v571_v8 = vsub.f32 %v3325_v19, %v3624_v29 }
 0x29f   : > { %622 = vadd.xlane.f32.xlu0 %v621_v17  ;;  %v538_v58 = vpop.xlane.xlu0 %537  ;;  %v624_v18 = vsel %vm493_vm1, %v586_v56, 0.0  ;;  %v572_v12 = vsub.f32 %v3328_v20, %v3626_v55 }
 0x2a0   : > { %v3634_v61 = vmul.f32 0.125, %v538_v58  ;;  %v541_v34 = vpop.xlane.xlu1 %540  ;;  %v587_v39 = vmul.f32 %v571_v8, %v571_v8 }
 0x2a1   : > { %v3636_v9 = vmul.f32 0.125, %v541_v34  ;;  %v588_v15 = vmul.f32 %v572_v12, %v572_v12 }
 0x2a2   : > { %625 = vadd.xlane.f32.xlu1 %v624_v18  ;;  %v627_v1 = vsel %vm493_vm1, %v587_v39, 0.0  ;;  %v573_v19 = vsub.f32 %v3337_v23, %v3634_v61 }
 0x2a3   : > { %v574_v2 = vsub.f32 %v3340_v24, %v3636_v9  ;;  %628 = vadd.xlane.f32.xlu0 %v627_v1  ;;  %v630_v42 = vsel %vm493_vm1, %v588_v15, 0.0  ;;  %v3646_v37 = vpop.xlane.xlu0 %592  ;;  %v3655_v24 = vld [vmem:[%s4391_s9] sm:$0xff]  }
 0x2a4   : > { %v589_v20 = vmul.f32 %v573_v19, %v573_v19  ;;  %v596_v49 = vpop.xlane.xlu1 %595  ;;  %2843 = vmatprep.subr.bf16.mxu1 %v3655_v24 }
 0x2a5   : > { %v590_v33 = vmul.f32 %v574_v2, %v574_v2 }
 0x2a6   : > { %631 = vadd.xlane.f32.xlu1 %v630_v42  ;;  %v633_v43 = vsel %vm493_vm1, %v589_v20, 0.0 }
 0x2a7   : > { %634 = vadd.xlane.f32.xlu0 %v633_v43  ;;  %v636_v3 = vsel %vm493_vm1, %v590_v33, 0.0  ;;  %v3648_v16 = vpop.xlane.xlu0 %598 }
 0x2a8   : > { %v602_v23 = vpop.xlane.xlu1 %601 }
 0x2aa   : > { %637 = vadd.xlane.f32.xlu1 %v636_v3 }
 0x2ab   : > { %v3650_v44 = vpop.xlane.xlu0 %604 }
 0x2ac   : > { %v3657_v47 = vpop.xlane.xlu1 %607 }
 0x2af   : > { %v3659_v6 = vpop.xlane.xlu0 %610 }
 0x2b0   : > { %v3662_v13 = vpop.xlane.xlu1 %613 }
 0x307   : > { %v1069_v51 = vpop.xlane.xlu0 %1068 }
 0x308   : > { %v1111_v35 = vmul.f32 0.125, %v1069_v51 }
 0x30a   : > { %vm1127_vm3 = vcmp.gt.f32.partialorder %v1111_v35, 0.0 }
 0x30b   : > { %v1072_v14 = vpop.xlane.xlu1 %1071  ;;  %v1063_v52 = vpop.xlane.xlu0 %1062  ;;  %v1143_v30 = vsel %vm1127_vm3, %v1111_v35, 1.0 }
 0x30c   : > { %v1112_v7 = vmul.f32 0.125, %v1072_v14  ;;  %v1109_v56 = vmul.f32 0.125, %v1063_v52  ;;  %2921 = vrcp.f32 %v1143_v30 }
 0x30e   : > { %vm1128_vm4 = vcmp.gt.f32.partialorder %v1112_v7, 0.0  ;;  %vm1125_vm5 = vcmp.gt.f32.partialorder %v1109_v56, 0.0 }
 0x30f   : > { %v1144_v17 = vsel %vm1128_vm4, %v1112_v7, 1.0  ;;  %v1141_v8 = vsel %vm1125_vm5, %v1109_v56, 1.0  ;;  %v1066_v58 = vpop.xlane.xlu1 %1065  ;;  %v642_v7 = vmul.f32 0.125, %v602_v23  ;;  %v641_v23 = vmul.f32 0.125, %v3648_v16 }
 0x310   : > { %2923 = vrcp.f32 %v1144_v17  ;;  %v1110_v18 = vmul.f32 0.125, %v1066_v58  ;;  %v1081_v12 = vpop.xlane.xlu0 %1080 }
 0x311   : > { %2925 = vrcp.f32 %v1141_v8  ;;  %v1115_v34 = vmul.f32 0.125, %v1081_v12 }
 0x312   : > { %vm1126_vm6 = vcmp.gt.f32.partialorder %v1110_v18, 0.0 }
 0x313   : > { %v1142_v39 = vsel %vm1126_vm6, %v1110_v18, 1.0  ;;  %vm1131_vm7 = vcmp.gt.f32.partialorder %v1115_v34, 0.0  ;;  %v1084_v15 = vpop.xlane.xlu1 %1083 }
 0x314   : > { %2927 = vrcp.f32 %v1142_v39  ;;  %v1147_v1 = vsel %vm1131_vm7, %v1115_v34, 1.0  ;;  %v1116_v19 = vmul.f32 0.125, %v1084_v15  ;;  %v1075_v2 = vpop.xlane.xlu0 %1074  ;;  %v640_v39 = vmul.f32 0.125, %v596_v49 }
 0x315   : > { %v1113_v42 = vmul.f32 0.125, %v1075_v2  ;;  %2929 = vrcp.f32 %v1147_v1  ;;  %v639_v15 = vmul.f32 0.125, %v3646_v37 }
 0x316   : > { %vm1132_vm8 = vcmp.gt.f32.partialorder %v1116_v19, 0.0  ;;  %v2922_v35 = vpop.eup %2921 }
 0x317   : > { %v1148_v20 = vsel %vm1132_vm8, %v1116_v19, 1.0  ;;  %vm1129_vm9 = vcmp.gt.f32.partialorder %v1113_v42, 0.0  ;;  %v1078_v33 = vpop.xlane.xlu1 %1077  ;;  %v1175_v58 = vmul.f32 %v2922_v35, %v3509_v22  ;;  %v644_v35 = vmul.f32 0.125, %v3657_v47 }
 0x318   : > { %2931 = vrcp.f32 %v1148_v20  ;;  %v1145_v43 = vsel %vm1129_vm9, %v1113_v42, 1.0  ;;  %v1114_v3 = vmul.f32 0.125, %v1078_v33  ;;  %v1093_v51 = vpop.xlane.xlu0 %1092 }
 0x319   : > { %2933 = vrcp.f32 %v1145_v43  ;;  %v1119_v14 = vmul.f32 0.125, %v1093_v51 }
 0x31a   : > { %v2924_v52 = vpop.eup %2923  ;;  %vm1130_vm10 = vcmp.gt.f32.partialorder %v1114_v3, 0.0 }
 0x31b   : > { %v2926_v30 = vpop.eup %2925  ;;  %v1176_v56 = vmul.f32 %v2924_v52, %v3517_v36  ;;  %v1146_v17 = vsel %vm1130_vm10, %v1114_v3, 1.0  ;;  %vm1135_vm11 = vcmp.gt.f32.partialorder %v1119_v14, 0.0  ;;  %v1096_v8 = vpop.xlane.xlu1 %1095  ;;  %v643_v36 = vmul.f32 0.125, %v3650_v44 }
 0x31c   : > { %2935 = vrcp.f32 %v1146_v17  ;;  %v1120_v18 = vmul.f32 0.125, %v1096_v8  ;;  %v1087_v12 = vpop.xlane.xlu0 %1086  ;;  %v1173_v34 = vmul.f32 %v2926_v30, %v3512_v25  ;;  %v1151_v1 = vsel %vm1135_vm11, %v1119_v14, 1.0 }
 0x31d   : > { %v1117_v19 = vmul.f32 0.125, %v1087_v12  ;;  %v1192_v42 = vmul.f32 %v1176_v56, %v642_v7  ;;  %v1191_v3 = vmul.f32 %v1175_v58, %v641_v23  ;;  %2937 = vrcp.f32 %v1151_v1 }
 0x31e   : > { %v2928_v2 = vpop.eup %2927  ;;  %vm1136_vm12 = vcmp.gt.f32.partialorder %v1120_v18, 0.0  ;;  %v1189_v43 = vmul.f32 %v1173_v34, %v639_v15  ;;  %v645_v52 = vmul.f32 0.125, %v3659_v6  ;;  %v646_v23 = vmul.f32 0.125, %v3662_v13 }
 0x31f   : > { %v1152_v20 = vsel %vm1136_vm12, %v1120_v18, 1.0  ;;  %vm1133_vm13 = vcmp.gt.f32.partialorder %v1117_v19, 0.0  ;;  %v1090_v22 = vpop.xlane.xlu1 %1089  ;;  %v1174_v33 = vmul.f32 %v2928_v2, %v3523_v48  ;;  %v2930_v51 = vpop.eup %2929  ;;  %v1208_v30 = vadd.f32 %v1192_v42, %v3465_v21 }
 0x320   : > { %v1149_v25 = vsel %vm1133_vm13, %v1117_v19, 1.0  ;;  %v1118_v49 = vmul.f32 0.125, %v1090_v22  ;;  %v1105_v37 = vpop.xlane.xlu0 %1104  ;;  %v1205_v17 = vadd.f32 %v1189_v43, %v3451_v57  ;;  %v1207_v47 = vadd.f32 %v1191_v3, %v3459_v0 }
 0x321   : > { %2939 = vrcp.f32 %v1149_v25  ;;  %v1123_v16 = vmul.f32 0.125, %v1105_v37  ;;  %v1190_v14 = vmul.f32 %v1174_v33, %v640_v39  ;;  %v1179_v39 = vmul.f32 %v2930_v51, %v3532_v50  ;;  %v2920_v50 = vld [vmem:[%s4391_s9 + $0x8] sm:$0xff]  }
 0x322   : > { %v2932_v44 = vpop.eup %2931  ;;  %2941 = vrcp.f32 %v1152_v20  ;;  %vm1134_vm14 = vcmp.gt.f32.partialorder %v1118_v49, 0.0  ;;  %v3679_v1 = vpack.c.bf16 %v1208_v30, %v1207_v47 }
 0x323   : > { %v2934_v48 = vpop.eup %2933  ;;  %v1150_v7 = vsel %vm1134_vm14, %v1118_v49, 1.0  ;;  %vm1139_vm15 = vcmp.gt.f32.partialorder %v1123_v16, 0.0  ;;  %v1108_v56 = vpop.xlane.xlu1 %1107  ;;  %v1206_v8 = vadd.f32 %v1190_v14, %v3455_v60  ;;  %v1180_v57 = vmul.f32 %v2932_v44, %v3535_v54 }
 0x324   : > { %2943 = vrcp.f32 %v1150_v7  ;;  %v1124_v58 = vmul.f32 0.125, %v1108_v56  ;;  %v1099_v18 = vpop.xlane.xlu0 %1098  ;;  %v1177_v12 = vmul.f32 %v2934_v48, %v3543_v59  ;;  %v1155_v6 = vsel %vm1139_vm15, %v1123_v16, 1.0 }
 0x325   : > { %v1121_v34 = vmul.f32 0.125, %v1099_v18  ;;  %v1221_v21 = vpack.c.bf16 %v1206_v8, %v1205_v17  ;;  %2945 = vrcp.f32 %v1155_v6  ;;  %v1195_v20 = vmul.f32 %v1179_v39, %v645_v52 }
 0x326   : > { %v2936_v15 = vpop.eup %2935  ;;  %vm1140_vm0 = vcmp.gt.f32.partialorder %v1124_v58, 0.0  ;;  %v1193_v19 = vmul.f32 %v1177_v12, %v643_v36  ;;  %v1196_v13 = vmul.f32 %v1180_v57, %v646_v23 }
 0x327   : > { %v1156_v60 = vsel %vm1140_vm0, %v1124_v58, 1.0  ;;  %vm1137_vm3 = vcmp.gt.f32.partialorder %v1121_v34, 0.0  ;;  %v1102_v0 = vpop.xlane.xlu1 %1101  ;;  %2864 = vmatprep.subr.msk.bf16.mxu0 %vm493_vm1, %v1221_v21  ;;  %2809 = vmatprep.mubr.msk.bf16.mxu0 %vm493_vm1, %v1221_v21  ;;  %v1230_v59 = vsel %vm493_vm1, %v1221_v21, 0  ;;  %v1178_v2 = vmul.f32 %v2936_v15, %v3547_v62  ;;  %v2938_v22 = vpop.eup %2937 }
 0x328   : > { %v1153_v36 = vsel %vm1137_vm3, %v1121_v34, 1.0  ;;  %v1122_v54 = vmul.f32 0.125, %v1102_v0  ;;  %2827 = vmatprep.mubr.msk.bf16.mxu1 %vm493_vm1, %v1221_v21  ;;  %2794 = vmatpush3.bf16.xpose.msra.mxu0 %v1230_v59  ;;  %v617_v42 = vpop.xlane.xlu0 %616  ;;  %v1209_v49 = vadd.f32 %v1193_v19, %v3471_v28  ;;  %v1212_v14 = vadd.f32 %v1196_v13, %v3487_v45 }
 0x329   : > { %2947 = vrcp.f32 %v1153_v36  ;;  %2828 = vmatmul.mubr.msk.bf16.vlgmr.msra.gmra.mrb[16].mxu1 %vm493_vm1, %v3679_v1  ;;  %2865 = vmatprep.subr.msk.bf16.mxu0 %vm493_vm1, %v3679_v1  ;;  %v1194_v62 = vmul.f32 %v1178_v2, %v644_v35  ;;  %v647_v3 = vmul.f32 0.125, %v617_v42  ;;  %v1183_v7 = vmul.f32 %v2938_v22, %v3555_v27 }
 0x32a   : > { %2949 = vrcp.f32 %v1156_v60  ;;  %vm1138_vm4 = vcmp.gt.f32.partialorder %v1122_v54, 0.0  ;;  %2844 = vmatpush3.bf16.msra.mxu1 %v3655_v24  ;;  %v1211_v24 = vadd.f32 %v1195_v20, %v3482_v41  ;;  %v1233_v45 = vsel %vm493_vm1, %v3679_v1, 0 }
 0x32b   : > { %v2940_v33 = vpop.eup %2939  ;;  %v1154_v43 = vsel %vm1138_vm4, %v1122_v54, 1.0  ;;  %v620_v25 = vpop.xlane.xlu1 %619  ;;  %v1210_v37 = vadd.f32 %v1194_v62, %v3477_v32  ;;  %2845 = vmatprep.subr.bf16.mxu1 %v2920_v50 }
 0x32c   : > { %v2942_v51 = vpop.eup %2941  ;;  %2951 = vrcp.f32 %v1154_v43  ;;  %v1181_v35 = vmul.f32 %v2940_v33, %v3567_v40  ;;  %v623_v16 = vpop.xlane.xlu0 %622  ;;  %v648_v44 = vmul.f32 0.125, %v620_v25  ;;  %v3709_v40 = vpack.c.bf16 %v1212_v14, %v1211_v24  ;;  %v3766_v43 = vld [vmem:[%s3760_s24 + $0x10] sm:$0xff] }
 0x32d   : > { %v649_v52 = vmul.f32 0.125, %v623_v16  ;;  %v3700_v30 = vpack.c.bf16 %v1210_v37, %v1209_v49  ;;  %v1184_v8 = vmul.f32 %v2942_v51, %v3559_v31  ;;  %v1808_v25 = vsel %vm493_vm1, %v3766_v43, 0.0  ;;  %v3773_v49 = vld [vmem:[%s3760_s24 + $0x18] sm:$0xff]  ;;  %v2609_v37 = vld [vmem:[%s4390_s8] ss:$0 sm:$0xff] }
 0x32e   : > { %v2944_v48 = vpop.eup %2943  ;;  %2846 = vmatpush3.bf16.msra.mxu1 %v2920_v50  ;;  %v1197_v28 = vmul.f32 %v1181_v35, %v647_v3  ;;  %v1811_v51 = vsel %vm493_vm1, %v3773_v49, 0.0 }
 0x32f   : > { %v1182_v32 = vmul.f32 %v2944_v48, %v3571_v4  ;;  %v626_v56 = vpop.xlane.xlu1 %625  ;;  %2831 = vmatprep.mubr.msk.bf16.mxu1 %vm493_vm1, %v3700_v30  ;;  %v1199_v17 = vmul.f32 %v1183_v7, %v649_v52  ;;  %v2946_v4 = vpop.eup %2945 }
 0x330   : > { %v650_v41 = vmul.f32 0.125, %v626_v56  ;;  %2796 = vmatpush3.bf16.xpose.msra.mxu0 %v1233_v45  ;;  %v629_v47 = vpop.xlane.xlu0 %628  ;;  %v1213_v12 = vadd.f32 %v1197_v28, %v3597_v10  ;;  %v1187_v23 = vmul.f32 %v2946_v4, %v3579_v46 }
 0x331   : > { %v1198_v27 = vmul.f32 %v1182_v32, %v648_v44  ;;  %2832 = vmatmul.mubr.msk.bf16.gmra.mrb[20].mxu1 %vm493_vm1, %v3709_v40  ;;  %2866 = vmatprep.subr.msk.bf16.mxu0 %vm493_vm1, %v3700_v30  ;;  %v651_v34 = vmul.f32 0.125, %v629_v47  ;;  %v1215_v39 = vadd.f32 %v1199_v17, %v3611_v38  ;;  %v1236_v38 = vsel %vm493_vm1, %v3700_v30, 0 }
 0x332   : > { %v1200_v58 = vmul.f32 %v1184_v8, %v650_v41 }
 0x333   : > { %v2948_v18 = vpop.eup %2947  ;;  %v1214_v6 = vadd.f32 %v1198_v27, %v3601_v5  ;;  %v632_v21 = vpop.xlane.xlu1 %631 }
 0x334   : > { %v2950_v31 = vpop.eup %2949  ;;  %v1216_v15 = vadd.f32 %v1200_v58, %v3613_v26  ;;  %v1185_v19 = vmul.f32 %v2948_v18, %v3591_v11  ;;  %v635_v57 = vpop.xlane.xlu0 %634  ;;  %v652_v0 = vmul.f32 0.125, %v632_v21 }
 0x335   : > { %v1225_v60 = vpack.c.bf16 %v1214_v6, %v1213_v12  ;;  %v653_v59 = vmul.f32 0.125, %v635_v57  ;;  %v1188_v11 = vmul.f32 %v2950_v31, %v3583_v53  ;;  %v1239_v53 = vsel %vm493_vm1, %v3709_v40, 0 }
 0x336   : > { %v2952_v2 = vpop.eup %2951  ;;  %v1226_v50 = vpack.c.bf16 %v1216_v15, %v1215_v39  ;;  %v1201_v10 = vmul.f32 %v1185_v19, %v651_v34 }
 0x337   : > { %v1186_v5 = vmul.f32 %v2952_v2, %v3595_v63  ;;  %v638_v36 = vpop.xlane.xlu1 %637  ;;  %2835 = vmatprep.mubr.msk.bf16.mxu1 %vm493_vm1, %v1225_v60  ;;  %v1203_v26 = vmul.f32 %v1187_v23, %v653_v59 }
 0x338   : > { %v654_v54 = vmul.f32 0.125, %v638_v36  ;;  %2798 = vmatpush3.bf16.xpose.msra.mxu0 %v1236_v38  ;;  %v1217_v63 = vadd.f32 %v1201_v10, %v3624_v29  ;;  %v1242_v29 = vsel %vm493_vm1, %v1225_v60, 0 }
 0x339   : > { %v1202_v42 = vmul.f32 %v1186_v5, %v652_v0  ;;  %2836 = vmatmul.mubr.msk.bf16.gmra.mrb[24].mxu1 %vm493_vm1, %v1226_v50  ;;  %2867 = vmatprep.subr.msk.bf16.mxu0 %vm493_vm1, %v3709_v40  ;;  %v1219_v20 = vadd.f32 %v1203_v26, %v3634_v61 }
 0x33a   : > { %v1204_v46 = vmul.f32 %v1188_v11, %v654_v54 }
 0x33b   : > { %v1218_v62 = vadd.f32 %v1202_v42, %v3626_v55  ;;  %v1245_v55 = vsel %vm493_vm1, %v1226_v50, 0 }
 0x33c   : > { %v1220_v22 = vadd.f32 %v1204_v46, %v3636_v9 }
 0x33d   : > { %v1227_v13 = vpack.c.bf16 %v1218_v62, %v1217_v63 }
 0x33e   : > { %v1228_v33 = vpack.c.bf16 %v1220_v22, %v1219_v20 }
 0x33f   : > { %2839 = vmatprep.mubr.msk.bf16.mxu1 %vm493_vm1, %v1227_v13  ;;  %v1248_v61 = vsel %vm493_vm1, %v1227_v13, 0 }
 0x340   : > { %2800 = vmatpush3.bf16.xpose.msra.mxu0 %v1239_v53  ;;  %v1251_v9 = vsel %vm493_vm1, %v1228_v33, 0 }
 0x341   : > { %2840 = vmatmul.mubr.msk.bf16.gmra.mrb[28].mxu1 %vm493_vm1, %v1228_v33  ;;  %2868 = vmatprep.subr.msk.bf16.mxu0 %vm493_vm1, %v1225_v60 }
 0x348   : > { %2802 = vmatpush3.bf16.xpose.msra.mxu0 %v1242_v29 }
 0x349   : > { %2869 = vmatprep.subr.msk.bf16.mxu0 %vm493_vm1, %v1226_v50 }
 0x350   : > { %2804 = vmatpush3.bf16.xpose.msra.mxu0 %v1245_v55 }
 0x351   : > { %2870 = vmatprep.subr.msk.bf16.mxu0 %vm493_vm1, %v1227_v13 }
 0x358   : > { %2806 = vmatpush3.bf16.xpose.msra.mxu0 %v1248_v61 }
 0x359   : > { %2871 = vmatprep.subr.msk.bf16.mxu0 %vm493_vm1, %v1228_v33 }
 0x360   : > { %2808 = vmatpush3.bf16.xpose.msra.mxu0 %v1251_v9 }
 0x367   : > { %2810 = vmatmul.mubr.msk.bf16.vlgmr.msra.gmra.mrb[16].mxu0 %vm493_vm1, %v3679_v1  ;;  %v3763_v1 = vld [vmem:[%s3760_s24 + $0x8] sm:$0xff] }
 0x368   : > { %2813 = vmatprep.mubr.msk.bf16.mxu0 %vm493_vm1, %v3700_v30  ;;  %v1805_v3 = vsel %vm493_vm1, %v3763_v1, 0.0 }
 0x369   : > { %1806 = vadd.xlane.f32.xlu0 %v1805_v3 }
 0x36d   : > { %1809 = vadd.xlane.f32.xlu0 %v1808_v25 }
 0x36f   : > { %2814 = vmatmul.mubr.msk.bf16.gmra.mrb[20].mxu0 %vm493_vm1, %v3709_v40 }
 0x370   : > { %2817 = vmatprep.mubr.msk.bf16.mxu0 %vm493_vm1, %v1225_v60 }
 0x371   : > { %1812 = vadd.xlane.f32.xlu0 %v1811_v51 }
 0x377   : > { %2818 = vmatmul.mubr.msk.bf16.gmra.mrb[24].mxu0 %vm493_vm1, %v1226_v50 }
 0x378   : > { %2821 = vmatprep.mubr.msk.bf16.mxu0 %vm493_vm1, %v1227_v13 }
 0x37f   : > { %2822 = vmatmul.mubr.msk.bf16.gmra.mrb[28].mxu0 %vm493_vm1, %v1228_v33 }
 0x3fc   : > { %v2829_v35 = vpop.f32.mrb[16].mxu1 }
 0x3fd   : > { %v1580_v16 = vadd.f32 %v2829_v35, %v2609_v37  ;;  %v1571_v14 = vpop.f32.mrb[17].mxu1 }
 0x3fe   : > { %v1572_v44 = vadd.f32 %v2609_v37, %v1571_v14  ;;  %v2830_v52 = vpop.f32.mrb[18].mxu1 }
 0x3ff   : > { %v1583_v30 = vadd.f32 %v2830_v52, %v2609_v37  ;;  %v1574_v24 = vpop.f32.mrb[19].mxu1  ;;  %v1636_v7 = vmax.f32 %v1580_v16, 0.0 }
 0x400   : > { %v1575_v48 = vadd.f32 %v2609_v37, %v1574_v24  ;;  %v1634_v32 = vmax.f32 %v1572_v44, 0.0 }
 0x401   : > { %v1637_v28 = vmax.f32 %v1583_v30, 0.0 }
 0x402   : > { %v1635_v56 = vmax.f32 %v1575_v48, 0.0 }
 0x403   : > { %v1651_v45 = vpack.c.bf16 %v1637_v28, %v1636_v7 }
 0x404   : > { %v1650_v40 = vpack.c.bf16 %v1635_v56, %v1634_v32  ;;  %v2833_v17 = vpop.f32.mrb[20].mxu1 }
 0x405   : > { %v1596_v8 = vadd.f32 %v2833_v17, %v2609_v37  ;;  %v1587_v41 = vpop.f32.mrb[21].mxu1 }
 0x406   : > { %v1588_v47 = vadd.f32 %v2609_v37, %v1587_v41  ;;  %v2834_v27 = vpop.f32.mrb[22].mxu1  ;;  %2847 = vmatprep.mubr.msk.bf16.mxu1 %vm843_vm2, %v1650_v40 }
 0x407   : > { %v1599_v4 = vadd.f32 %v2834_v27, %v2609_v37  ;;  %v1590_v58 = vpop.f32.mrb[23].mxu1  ;;  %2848 = vmatmul.mubr.msk.bf16.vlgmr.msra.gmra.mrb[32].mxu1 %vm843_vm2, %v1651_v45  ;;  %v1640_v12 = vmax.f32 %v1596_v8, 0.0 }
 0x408   : > { %v1591_v18 = vadd.f32 %v2609_v37, %v1590_v58  ;;  %v1638_v34 = vmax.f32 %v1588_v47, 0.0 }
 0x409   : > { %v1641_v6 = vmax.f32 %v1599_v4, 0.0 }
 0x40a   : > { %v1639_v21 = vmax.f32 %v1591_v18, 0.0 }
 0x40b   : > { %v1653_v31 = vpack.c.bf16 %v1641_v6, %v1640_v12 }
 0x40c   : > { %v1652_v39 = vpack.c.bf16 %v1639_v21, %v1638_v34  ;;  %v2837_v15 = vpop.f32.mrb[24].mxu1 }
 0x40d   : > { %v1612_v19 = vadd.f32 %v2837_v15, %v2609_v37  ;;  %v1603_v57 = vpop.f32.mrb[25].mxu1 }
 0x40e   : > { %v1604_v60 = vadd.f32 %v2609_v37, %v1603_v57  ;;  %v2838_v0 = vpop.f32.mrb[26].mxu1  ;;  %2851 = vmatprep.mubr.msk.bf16.mxu1 %vm843_vm2, %v1652_v39 }
 0x40f   : > { %v1615_v59 = vadd.f32 %v2838_v0, %v2609_v37  ;;  %v1606_v2 = vpop.f32.mrb[27].mxu1  ;;  %2852 = vmatmul.mubr.msk.bf16.gmra.mrb[36].mxu1 %vm843_vm2, %v1653_v31  ;;  %v1644_v23 = vmax.f32 %v1612_v19, 0.0 }
 0x410   : > { %v1607_v50 = vadd.f32 %v2609_v37, %v1606_v2  ;;  %v1642_v5 = vmax.f32 %v1604_v60, 0.0 }
 0x411   : > { %v1645_v10 = vmax.f32 %v1615_v59, 0.0 }
 0x412   : > { %v1643_v36 = vmax.f32 %v1607_v50, 0.0 }
 0x413   : > { %v1655_v38 = vpack.c.bf16 %v1645_v10, %v1644_v23 }
 0x414   : > { %v1654_v26 = vpack.c.bf16 %v1643_v36, %v1642_v5  ;;  %v2841_v11 = vpop.f32.mrb[28].mxu1 }
 0x415   : > { %v1628_v54 = vadd.f32 %v2841_v11, %v2609_v37  ;;  %v1619_v42 = vpop.f32.mrb[29].mxu1 }
 0x416   : > { %v1620_v46 = vadd.f32 %v2609_v37, %v1619_v42  ;;  %v2842_v63 = vpop.f32.mrb[30].mxu1  ;;  %2855 = vmatprep.mubr.msk.bf16.mxu1 %vm843_vm2, %v1654_v26 }
 0x417   : > { %v1631_v62 = vadd.f32 %v2842_v63, %v2609_v37  ;;  %v1622_v20 = vpop.f32.mrb[31].mxu1  ;;  %2856 = vmatmul.mubr.msk.bf16.gmra.mrb[40].mxu1 %vm843_vm2, %v1655_v38  ;;  %v1648_v13 = vmax.f32 %v1628_v54, 0.0 }
 0x418   : > { %v1623_v22 = vadd.f32 %v2609_v37, %v1622_v20  ;;  %v1646_v53 = vmax.f32 %v1620_v46, 0.0 }
 0x419   : > { %v1649_v33 = vmax.f32 %v1631_v62, 0.0 }
 0x41a   : > { %v1647_v29 = vmax.f32 %v1623_v22, 0.0 }
 0x41b   : > { %v1657_v55 = vpack.c.bf16 %v1649_v33, %v1648_v13 }
 0x41c   : > { %v1656_v61 = vpack.c.bf16 %v1647_v29, %v1646_v53 }
 0x41e   : > { %2859 = vmatprep.mubr.msk.bf16.mxu1 %vm843_vm2, %v1656_v61 }
 0x41f   : > { %2860 = vmatmul.mubr.msk.bf16.gmra.mrb[44].mxu1 %vm843_vm2, %v1657_v55 }
 0x43a   : > { %v2811_v9 = vpop.f32.mrb[16].mxu0 }
 0x43b   : > { %v2579_v3 = vmul.f32 -1.442695, %v2811_v9  ;;  %v1287_v25 = vpop.f32.mrb[17].mxu0 }
 0x43c   : > { %v2577_v51 = vmul.f32 -1.442695, %v1287_v25  ;;  %v2812_v35 = vpop.f32.mrb[18].mxu0  ;;  %v3796_v25 = vld [vmem:[%s3760_s24] sm:$0xff] }
 0x43d   : > { %2953 = vpow2.f32 %v2579_v3  ;;  %v2580_v16 = vmul.f32 -1.442695, %v2812_v35  ;;  %v1290_v14 = vpop.f32.mrb[19].mxu0  ;;  %v1802_v35 = vsel %vm493_vm1, %v3796_v25, 0.0 }
 0x43e   : > { %2955 = vpow2.f32 %v2577_v51  ;;  %v2578_v37 = vmul.f32 -1.442695, %v1290_v14  ;;  %1803 = vadd.xlane.f32.xlu1 %v1802_v35  ;;  %v3868_v35 = vld [vmem:[%s3760_s24 + $0x28] sm:$0xff] }
 0x43f   : > { %2957 = vpow2.f32 %v2580_v16 }
 0x440   : > { %2959 = vpow2.f32 %v2578_v37 }
 0x442   : > { %v2815_v44 = vpop.f32.mrb[20].mxu0 }
 0x443   : > { %v2583_v52 = vmul.f32 -1.442695, %v2815_v44  ;;  %v1303_v30 = vpop.f32.mrb[21].mxu0 }
 0x444   : > { %v2581_v24 = vmul.f32 -1.442695, %v1303_v30  ;;  %v2816_v48 = vpop.f32.mrb[22].mxu0 }
 0x445   : > { %2961 = vpow2.f32 %v2583_v52  ;;  %v2584_v7 = vmul.f32 -1.442695, %v2816_v48  ;;  %v1306_v28 = vpop.f32.mrb[23].mxu0 }
 0x446   : > { %2963 = vpow2.f32 %v2581_v24  ;;  %v2582_v32 = vmul.f32 -1.442695, %v1306_v28 }
 0x447   : > { %v2954_v56 = vpop.eup %2953  ;;  %2965 = vpow2.f32 %v2584_v7 }
 0x448   : > { %v2956_v45 = vpop.eup %2955  ;;  %v1400_v40 = vadd.f32 1.0, %v2954_v56  ;;  %2967 = vpow2.f32 %v2582_v32 }
 0x449   : > { %v2958_v17 = vpop.eup %2957  ;;  %v1398_v8 = vadd.f32 1.0, %v2956_v45 }
 0x44a   : > { %v2960_v41 = vpop.eup %2959  ;;  %2969 = vrcp.f32 %v1400_v40  ;;  %v1401_v47 = vadd.f32 1.0, %v2958_v17  ;;  %v2819_v27 = vpop.f32.mrb[24].mxu0 }
 0x44b   : > { %2971 = vrcp.f32 %v1398_v8  ;;  %v1399_v4 = vadd.f32 1.0, %v2960_v41  ;;  %v2587_v58 = vmul.f32 -1.442695, %v2819_v27  ;;  %v1319_v18 = vpop.f32.mrb[25].mxu0 }
 0x44c   : > { %2973 = vrcp.f32 %v1401_v47  ;;  %v2585_v12 = vmul.f32 -1.442695, %v1319_v18  ;;  %v2820_v6 = vpop.f32.mrb[26].mxu0 }
 0x44d   : > { %2975 = vrcp.f32 %v1399_v4  ;;  %v2588_v34 = vmul.f32 -1.442695, %v2820_v6  ;;  %v1322_v21 = vpop.f32.mrb[27].mxu0 }
 0x44e   : > { %2977 = vpow2.f32 %v2587_v58  ;;  %v2586_v31 = vmul.f32 -1.442695, %v1322_v21 }
 0x44f   : > { %v2962_v39 = vpop.eup %2961  ;;  %2979 = vpow2.f32 %v2585_v12 }
 0x450   : > { %v2964_v15 = vpop.eup %2963  ;;  %v1404_v19 = vadd.f32 1.0, %v2962_v39  ;;  %2981 = vpow2.f32 %v2588_v34  ;;  %v3809_v34 = vld [vmem:[%s4392_s10] ss:$0 sm:$0xff] }
 0x451   : > { %v2966_v57 = vpop.eup %2965  ;;  %v1402_v60 = vadd.f32 1.0, %v2964_v15  ;;  %2983 = vpow2.f32 %v2586_v31 }
 0x452   : > { %v2968_v0 = vpop.eup %2967  ;;  %2985 = vrcp.f32 %v1404_v19  ;;  %v1405_v59 = vadd.f32 1.0, %v2966_v57  ;;  %v2823_v2 = vpop.f32.mrb[28].mxu0 }
 0x453   : > { %2987 = vrcp.f32 %v1402_v60  ;;  %v1403_v50 = vadd.f32 1.0, %v2968_v0  ;;  %v2591_v23 = vmul.f32 -1.442695, %v2823_v2  ;;  %v1335_v10 = vpop.f32.mrb[29].mxu0 }
 0x454   : > { %v2970_v5 = vpop.eup %2969  ;;  %2989 = vrcp.f32 %v1405_v59  ;;  %v2589_v36 = vmul.f32 -1.442695, %v1335_v10  ;;  %v2824_v38 = vpop.f32.mrb[30].mxu0 }
 0x455   : > { %v2972_v26 = vpop.eup %2971  ;;  %2991 = vrcp.f32 %v1403_v50  ;;  %v2592_v11 = vmul.f32 -1.442695, %v2824_v38  ;;  %v1338_v54 = vpop.f32.mrb[31].mxu0 }
 0x456   : > { %v2974_v42 = vpop.eup %2973  ;;  %2993 = vpow2.f32 %v2591_v23  ;;  %v2590_v46 = vmul.f32 -1.442695, %v1338_v54 }
 0x457   : > { %v2976_v63 = vpop.eup %2975  ;;  %v2662_v62 = vpack.c.bf16 %v2974_v42, %v2970_v5  ;;  %2995 = vpow2.f32 %v2589_v36 }
 0x458   : > { %v2978_v20 = vpop.eup %2977  ;;  %v2657_v22 = vpack.c.bf16 %v2976_v63, %v2972_v26  ;;  %2997 = vpow2.f32 %v2592_v11 }
 0x459   : > { %v2980_v13 = vpop.eup %2979  ;;  %2694 = vst [vmem:[%s3791_s19 + $0x8] sm:$0xff] %v2662_v62   ;;  %v1408_v33 = vadd.f32 1.0, %v2978_v20  ;;  %2999 = vpow2.f32 %v2590_v46  ;;  %v3848_v62 = vld [vmem:[%s3760_s24 + $0x20] sm:$0xff] }
 0x45a   : > { %v2982_v53 = vpop.eup %2981  ;;  %2658 = vst [vmem:[%s3791_s19] sm:$0xff] %v2657_v22   ;;  %v1406_v29 = vadd.f32 1.0, %v2980_v13 }
 0x45b   : > { %v2984_v55 = vpop.eup %2983  ;;  %3001 = vrcp.f32 %v1408_v33  ;;  %v1409_v61 = vadd.f32 1.0, %v2982_v53 }
 0x45c   : > { %v2986_v9 = vpop.eup %2985  ;;  %3003 = vrcp.f32 %v1406_v29  ;;  %v1407_v3 = vadd.f32 1.0, %v2984_v55  ;;  %v1814_v29 = vsel %vm493_vm1, %v3848_v62, 0.0 }
 0x45d   : > { %v2988_v51 = vpop.eup %2987  ;;  %3005 = vrcp.f32 %v1409_v61 }
 0x45e   : > { %v2990_v16 = vpop.eup %2989  ;;  %3007 = vrcp.f32 %v1407_v3 }
 0x45f   : > { %v2992_v14 = vpop.eup %2991  ;;  %v2672_v37 = vpack.c.bf16 %v2990_v16, %v2986_v9 }
 0x460   : > { %v2994_v44 = vpop.eup %2993  ;;  %v2667_v52 = vpack.c.bf16 %v2992_v14, %v2988_v51 }
 0x461   : > { %v2996_v30 = vpop.eup %2995  ;;  %2696 = vst [vmem:[%s3791_s19 + $0x18] sm:$0xff] %v2672_v37   ;;  %v1412_v24 = vadd.f32 1.0, %v2994_v44 }
 0x462   : > { %v2998_v48 = vpop.eup %2997  ;;  %2695 = vst [vmem:[%s3791_s19 + $0x10] sm:$0xff] %v2667_v52   ;;  %v1410_v7 = vadd.f32 1.0, %v2996_v30  ;;  %v1817_v30 = vsel %vm493_vm1, %v3868_v35, 0.0 }
 0x463   : > { %v3000_v28 = vpop.eup %2999  ;;  %3009 = vrcp.f32 %v1412_v24  ;;  %v1413_v32 = vadd.f32 1.0, %v2998_v48  ;;  %v3880_v48 = vld [vmem:[%s3760_s24 + $0x30] sm:$0xff] }
 0x464   : > { %3011 = vrcp.f32 %v1410_v7  ;;  %v1411_v56 = vadd.f32 1.0, %v3000_v28 }
 0x465   : > { %v3002_v45 = vpop.eup %3001  ;;  %3013 = vrcp.f32 %v1413_v32 }
 0x466   : > { %v3004_v40 = vpop.eup %3003  ;;  %3015 = vrcp.f32 %v1411_v56  ;;  %v1820_v56 = vsel %vm493_vm1, %v3880_v48, 0.0 }
 0x467   : > { %v3006_v17 = vpop.eup %3005 }
 0x468   : > { %v3008_v8 = vpop.eup %3007  ;;  %v2682_v41 = vpack.c.bf16 %v3006_v17, %v3002_v45  ;;  %v3890_v45 = vld [vmem:[%s3760_s24 + $0x38] sm:$0xff] }
 0x469   : > { %v2677_v47 = vpack.c.bf16 %v3008_v8, %v3004_v40  ;;  %v1823_v8 = vsel %vm493_vm1, %v3890_v45, 0.0 }
 0x46a   : > { %2698 = vst [vmem:[%s3791_s19 + $0x28] sm:$0xff] %v2682_v41   ;;  %v3900_v41 = vld [vmem:[%s3760_s24 + $0x40] sm:$0xff] }
 0x46b   : > { %2697 = vst [vmem:[%s3791_s19 + $0x20] sm:$0xff] %v2677_v47   ;;  %v1807_v47 = vpop.xlane.xlu0 %1806 }
 0x46d   : > { %v3010_v27 = vpop.eup %3009 }
 0x46e   : > { %v3012_v4 = vpop.eup %3011 }
 0x46f   : > { %v3014_v58 = vpop.eup %3013 }
 0x470   : > { %v3016_v18 = vpop.eup %3015  ;;  %v2692_v12 = vpack.c.bf16 %v3014_v58, %v3010_v27  ;;  %v1826_v58 = vsel %vm493_vm1, %v3900_v41, 0.0 }
 0x471   : > { %v2687_v6 = vpack.c.bf16 %v3016_v18, %v3012_v4  ;;  %v3910_v18 = vld [vmem:[%s3760_s24 + $0x50] sm:$0xff] }
 0x472   : > { %2700 = vst [vmem:[%s3791_s19 + $0x38] sm:$0xff] %v2692_v12   ;;  %v1810_v12 = vpop.xlane.xlu0 %1809 }
 0x473   : > { %2699 = vst [vmem:[%s3791_s19 + $0x30] sm:$0xff] %v2687_v6  }
 0x4da   : > { %v2849_v21 = vpop.f32.mrb[32].mxu1 }
 0x4db   : > { %v3812_v31 = vadd.f32 %v2849_v21, %v3809_v34  ;;  %v1739_v39 = vpop.f32.mrb[33].mxu1 }
 0x4dc   : > { %v2850_v15 = vpop.f32.mrb[34].mxu1  ;;  %v3815_v19 = vadd.f32 %v3809_v34, %v1739_v39  ;;  %v1832_v39 = vsel %vm493_vm1, %v3910_v18, 0.0 }
 0x4dd   : > { %v3818_v57 = vadd.f32 %v2850_v15, %v3809_v34  ;;  %v1742_v60 = vpop.f32.mrb[35].mxu1  ;;  %v1968_v0 = vsel %vm493_vm1, %v3812_v31, 0.0  ;;  %v3919_v15 = vmul.f32 0.125, %v1807_v47 }
 0x4de   : > { %1969 = vadd.xlane.f32.xlu0 %v1968_v0  ;;  %v3823_v59 = vadd.f32 %v3809_v34, %v1742_v60  ;;  %v1962_v50 = vsel %vm493_vm1, %v3815_v19, 0.0  ;;  %v3922_v60 = vld [vmem:[%s3760_s24 + $0x60] sm:$0xff]  ;;  %v3925_v0 = vld [vmem:[%s3760_s24 + $0x48] sm:$0xff] }
 0x4df   : > { %v1971_v2 = vsel %vm493_vm1, %v3818_v57, 0.0 }
 0x4e0   : > { %1972 = vadd.xlane.f32.xlu1 %v1971_v2  ;;  %v1965_v36 = vsel %vm493_vm1, %v3823_v59, 0.0 }
 0x4e2   : > { %v2853_v23 = vpop.f32.mrb[36].mxu1  ;;  %1963 = vadd.xlane.f32.xlu0 %v1962_v50  ;;  %v1867_v50 = vsub.f32 %v3763_v1, %v3919_v15 }
 0x4e3   : > { %v3830_v10 = vadd.f32 %v2853_v23, %v3809_v34  ;;  %v1755_v5 = vpop.f32.mrb[37].mxu1  ;;  %v3933_v23 = vmul.f32 0.125, %v1810_v12 }
 0x4e4   : > { %v2854_v38 = vpop.f32.mrb[38].mxu1  ;;  %1966 = vadd.xlane.f32.xlu1 %v1965_v36  ;;  %v3835_v26 = vadd.f32 %v3809_v34, %v1755_v5  ;;  %v3936_v5 = vld [vmem:[%s3760_s24 + $0x70] sm:$0xff]  ;;  %v1813_v36 = vpop.xlane.xlu0 %1812 }
 0x4e5   : > { %v3838_v11 = vadd.f32 %v2854_v38, %v3809_v34  ;;  %v1758_v54 = vpop.f32.mrb[39].mxu1  ;;  %v1980_v42 = vsel %vm493_vm1, %v3830_v10, 0.0  ;;  %4409 = vst [vmem:[#allocation8_spill] sm:$0xff] %v3936_v5  ;;  %v1829_v38 = vsel %vm493_vm1, %v3925_v0, 0.0  ;;  %v1868_v1 = vsub.f32 %v3766_v43, %v3933_v23 }
 0x4e6   : > { %1981 = vadd.xlane.f32.xlu0 %v1980_v42  ;;  %v3843_v46 = vadd.f32 %v3809_v34, %v1758_v54  ;;  %v1974_v20 = vsel %vm493_vm1, %v3835_v26, 0.0  ;;  %v3941_v54 = vld [vmem:[%s3760_s24 + $0x58] sm:$0xff]  ;;  %v1804_v42 = vpop.xlane.xlu1 %1803 }
 0x4e7   : > { %v1983_v63 = vsel %vm493_vm1, %v3838_v11, 0.0  ;;  %4410 = vst [vmem:[#allocation9_spill] sm:$0xff] %v3941_v54 }
 0x4e8   : > { %1984 = vadd.xlane.f32.xlu1 %v1983_v63  ;;  %v1977_v53 = vsel %vm493_vm1, %v3843_v46, 0.0  ;;  %v1844_v63 = vsel %vm493_vm1, %v3936_v5, 0.0 }
 0x4ea   : > { %v2857_v22 = vpop.f32.mrb[40].mxu1  ;;  %1975 = vadd.xlane.f32.xlu0 %v1974_v20  ;;  %v1883_v20 = vmul.f32 %v1867_v50, %v1867_v50 }
 0x4eb   : > { %v3853_v13 = vadd.f32 %v2857_v22, %v3809_v34  ;;  %v1771_v33 = vpop.f32.mrb[41].mxu1  ;;  %v3947_v22 = vmul.f32 0.125, %v1813_v36 }
 0x4ec   : > { %v2858_v55 = vpop.f32.mrb[42].mxu1  ;;  %1978 = vadd.xlane.f32.xlu1 %v1977_v53  ;;  %v3860_v61 = vadd.f32 %v3809_v34, %v1771_v33  ;;  %v1835_v33 = vsel %vm493_vm1, %v3941_v54, 0.0  ;;  %v3951_v53 = vmul.f32 0.125, %v1804_v42 }
 0x4ed   : > { %v1774_v9 = vpop.f32.mrb[43].mxu1  ;;  %v3863_v3 = vadd.f32 %v2858_v55, %v3809_v34  ;;  %v1992_v51 = vsel %vm493_vm1, %v3853_v13, 0.0  ;;  %v1884_v55 = vmul.f32 %v1868_v1, %v1868_v1 }
 0x4ee   : > { %1815 = vadd.xlane.f32.xlu0 %v1814_v29  ;;  %v1986_v16 = vsel %vm493_vm1, %v3860_v61, 0.0  ;;  %v3873_v37 = vadd.f32 %v3809_v34, %v1774_v9  ;;  %v3954_v29 = vld [vmem:[%s3760_s24 + $0x68] sm:$0xff]  ;;  %v1901_v9 = vsel %vm493_vm1, %v1883_v20, 0.0 }
 0x4ef   : > { %v1995_v52 = vsel %vm493_vm1, %v3863_v3, 0.0  ;;  %4411 = vst [vmem:[#allocation10_spill] sm:$0xff] %v3954_v29  ;;  %v1841_v43 = vsel %vm493_vm1, %v3954_v29, 0.0 }
 0x4f0   : > { %1993 = vadd.xlane.f32.xlu1 %v1992_v51  ;;  %v1989_v32 = vsel %vm493_vm1, %v3873_v37, 0.0  ;;  %v1869_v51 = vsub.f32 %v3773_v49, %v3947_v22 }
 0x4f2   : > { %1987 = vadd.xlane.f32.xlu0 %v1986_v16  ;;  %v2861_v14 = vpop.f32.mrb[44].mxu1  ;;  %v1866_v16 = vsub.f32 %v3796_v25, %v3951_v53 }
 0x4f3   : > { %v1787_v44 = vpop.f32.mrb[45].mxu1  ;;  %v3883_v28 = vadd.f32 %v2861_v14, %v3809_v34  ;;  %v3964_v14 = vld [vmem:[%s3760_s24 + $0x78] sm:$0xff] }
 0x4f4   : > { %1996 = vadd.xlane.f32.xlu1 %v1995_v52  ;;  %v2862_v24 = vpop.f32.mrb[46].mxu1  ;;  %v3893_v40 = vadd.f32 %v3809_v34, %v1787_v44  ;;  %4412 = vst [vmem:[#allocation11_spill] sm:$0xff] %v3964_v14  ;;  %v1885_v44 = vmul.f32 %v1869_v51, %v1869_v51  ;;  %v1904_v52 = vsel %vm493_vm1, %v1884_v55, 0.0 }
 0x4f5   : > { %v1790_v7 = vpop.f32.mrb[47].mxu1  ;;  %v2004_v17 = vsel %vm493_vm1, %v3883_v28, 0.0  ;;  %v3913_v6 = vadd.f32 %v2862_v24, %v3809_v34  ;;  %v1882_v24 = vmul.f32 %v1866_v16, %v1866_v16 }
 0x4f6   : > { %1818 = vadd.xlane.f32.xlu0 %v1817_v30  ;;  %v3903_v27 = vadd.f32 %v3809_v34, %v1790_v7  ;;  %v1998_v4 = vsel %vm493_vm1, %v3893_v40, 0.0  ;;  %v1838_v34 = vsel %vm493_vm1, %v3922_v60, 0.0  ;;  %v1847_v30 = vsel %vm493_vm1, %v3964_v14, 0.0 }
 0x4f7   : > { %v2007_v2 = vsel %vm493_vm1, %v3913_v6, 0.0  ;;  %v1907_v49 = vsel %vm493_vm1, %v1885_v44, 0.0  ;;  %v1898_v7 = vsel %vm493_vm1, %v1882_v24, 0.0 }
 0x4f8   : > { %1990 = vadd.xlane.f32.xlu1 %v1989_v32  ;;  %v2001_v21 = vsel %vm493_vm1, %v3903_v27, 0.0 }
 0x4fa   : > { %1821 = vadd.xlane.f32.xlu0 %v1820_v56 }
 0x4fc   : > { %2005 = vadd.xlane.f32.xlu1 %v2004_v17 }
 0x4fe   : > { %1824 = vadd.xlane.f32.xlu0 %v1823_v8 }
 0x500   : > { %1999 = vadd.xlane.f32.xlu1 %v1998_v4 }
 0x502   : > { %1827 = vadd.xlane.f32.xlu0 %v1826_v58 }
 0x504   : > { %2002 = vadd.xlane.f32.xlu1 %v2001_v21 }
 0x506   : > { %1833 = vadd.xlane.f32.xlu0 %v1832_v39 }
 0x508   : > { %2008 = vadd.xlane.f32.xlu1 %v2007_v2 }
 0x50a   : > { %1839 = vadd.xlane.f32.xlu0 %v1838_v34 }
 0x50c   : > { %1830 = vadd.xlane.f32.xlu1 %v1829_v38 }
 0x50e   : > { %1845 = vadd.xlane.f32.xlu0 %v1844_v63 }
 0x510   : > { %1836 = vadd.xlane.f32.xlu1 %v1835_v33 }
 0x512   : > { %1902 = vadd.xlane.f32.xlu0 %v1901_v9 }
 0x514   : > { %1842 = vadd.xlane.f32.xlu1 %v1841_v43 }
 0x516   : > { %1905 = vadd.xlane.f32.xlu0 %v1904_v52 }
 0x518   : > { %1848 = vadd.xlane.f32.xlu1 %v1847_v30 }
 0x51a   : > { %1908 = vadd.xlane.f32.xlu0 %v1907_v49 }
 0x51c   : > { %1899 = vadd.xlane.f32.xlu1 %v1898_v7 }
 0x56b   : > { %v1970_v32 = vpop.xlane.xlu0 %1969 }
 0x56c   : > { %v2012_v56 = vmul.f32 0.125, %v1970_v32 }
 0x56d   : > { %v1973_v17 = vpop.xlane.xlu1 %1972 }
 0x56e   : > { %v3972_v8 = vsub.f32 %v3812_v31, %v2012_v56  ;;  %v2013_v47 = vmul.f32 0.125, %v1973_v17 }
 0x56f   : > { %v1964_v4 = vpop.xlane.xlu0 %1963 }
 0x570   : > { %v3975_v58 = vsub.f32 %v3818_v57, %v2013_v47  ;;  %v2010_v12 = vmul.f32 0.125, %v1964_v4  ;;  %v2044_v21 = vmul.f32 %v3972_v8, %v3972_v8 }
 0x571   : > { %v1967_v39 = vpop.xlane.xlu1 %1966 }
 0x572   : > { %v3980_v2 = vsub.f32 %v3815_v19, %v2010_v12  ;;  %v2011_v34 = vmul.f32 0.125, %v1967_v39  ;;  %v2064_v50 = vsel %vm493_vm1, %v2044_v21, 0.0  ;;  %v2045_v31 = vmul.f32 %v3975_v58, %v3975_v58 }
 0x573   : > { %2065 = vadd.xlane.f32.xlu0 %v2064_v50  ;;  %v1982_v36 = vpop.xlane.xlu0 %1981 }
 0x574   : > { %v3986_v38 = vsub.f32 %v3823_v59, %v2011_v34  ;;  %v2016_v57 = vmul.f32 0.125, %v1982_v36  ;;  %v2067_v42 = vsel %vm493_vm1, %v2045_v31, 0.0  ;;  %v2042_v63 = vmul.f32 %v3980_v2, %v3980_v2 }
 0x575   : > { %v1985_v1 = vpop.xlane.xlu1 %1984  ;;  %2068 = vadd.xlane.f32.xlu1 %v2067_v42 }
 0x576   : > { %v3992_v19 = vsub.f32 %v3830_v10, %v2016_v57  ;;  %v2017_v20 = vmul.f32 0.125, %v1985_v1  ;;  %v2058_v33 = vsel %vm493_vm1, %v2042_v63, 0.0  ;;  %v2043_v55 = vmul.f32 %v3986_v38, %v3986_v38 }
 0x577   : > { %2059 = vadd.xlane.f32.xlu0 %v2058_v33  ;;  %v1976_v59 = vpop.xlane.xlu0 %1975 }
 0x578   : > { %v3998_v9 = vsub.f32 %v3838_v11, %v2017_v20  ;;  %v2014_v51 = vmul.f32 0.125, %v1976_v59  ;;  %v2061_v43 = vsel %vm493_vm1, %v2043_v55, 0.0  ;;  %v2048_v16 = vmul.f32 %v3992_v19, %v3992_v19 }
 0x579   : > { %v1979_v44 = vpop.xlane.xlu1 %1978  ;;  %2062 = vadd.xlane.f32.xlu1 %v2061_v43 }
 0x57a   : > { %v4004_v10 = vsub.f32 %v3835_v26, %v2014_v51  ;;  %v2015_v52 = vmul.f32 0.125, %v1979_v44  ;;  %v2076_v30 = vsel %vm493_vm1, %v2048_v16, 0.0  ;;  %v2049_v24 = vmul.f32 %v3998_v9, %v3998_v9 }
 0x57b   : > { %2077 = vadd.xlane.f32.xlu0 %v2076_v30  ;;  %v1816_v11 = vpop.xlane.xlu0 %1815 }
 0x57c   : > { %v4010_v49 = vsub.f32 %v3843_v46, %v2015_v52  ;;  %v4012_v7 = vmul.f32 0.125, %v1816_v11  ;;  %v2079_v32 = vsel %vm493_vm1, %v2049_v24, 0.0  ;;  %v2046_v56 = vmul.f32 %v4004_v10, %v4004_v10 }
 0x57d   : > { %v1994_v26 = vpop.xlane.xlu1 %1993  ;;  %2080 = vadd.xlane.f32.xlu1 %v2079_v32 }
 0x57e   : > { %v1870_v17 = vsub.f32 %v3848_v62, %v4012_v7  ;;  %v2020_v47 = vmul.f32 0.125, %v1994_v26  ;;  %v2070_v4 = vsel %vm493_vm1, %v2046_v56, 0.0  ;;  %v2047_v12 = vmul.f32 %v4010_v49, %v4010_v49 }
 0x57f   : > { %2071 = vadd.xlane.f32.xlu0 %v2070_v4  ;;  %v1988_v46 = vpop.xlane.xlu0 %1987 }
 0x580   : > { %v1886_v21 = vmul.f32 %v1870_v17, %v1870_v17  ;;  %v4023_v39 = vsub.f32 %v3853_v13, %v2020_v47  ;;  %v2018_v34 = vmul.f32 0.125, %v1988_v46  ;;  %v2073_v50 = vsel %vm493_vm1, %v2047_v12, 0.0 }
 0x581   : > { %v1997_v31 = vpop.xlane.xlu1 %1996  ;;  %2074 = vadd.xlane.f32.xlu1 %v2073_v50 }
 0x582   : > { %v4027_v36 = vsub.f32 %v3860_v61, %v2018_v34  ;;  %v2021_v57 = vmul.f32 0.125, %v1997_v31  ;;  %v1910_v42 = vsel %vm493_vm1, %v1886_v21, 0.0  ;;  %v2052_v63 = vmul.f32 %v4023_v39, %v4023_v39 }
 0x583   : > { %1911 = vadd.xlane.f32.xlu0 %v1910_v42  ;;  %v1819_v1 = vpop.xlane.xlu0 %1818 }
 0x584   : > { %v4033_v20 = vsub.f32 %v3863_v3, %v2021_v57  ;;  %v4035_v13 = vmul.f32 0.125, %v1819_v1  ;;  %v2088_v33 = vsel %vm493_vm1, %v2052_v63, 0.0  ;;  %v2050_v55 = vmul.f32 %v4027_v36, %v4027_v36 }
 0x585   : > { %v1991_v61 = vpop.xlane.xlu1 %1990  ;;  %2089 = vadd.xlane.f32.xlu1 %v2088_v33 }
 0x586   : > { %v1871_v59 = vsub.f32 %v3868_v35, %v4035_v13  ;;  %v2019_v51 = vmul.f32 0.125, %v1991_v61  ;;  %v2082_v43 = vsel %vm493_vm1, %v2050_v55, 0.0  ;;  %v2053_v16 = vmul.f32 %v4033_v20, %v4033_v20 }
 0x587   : > { %2083 = vadd.xlane.f32.xlu0 %v2082_v43  ;;  %v1822_v3 = vpop.xlane.xlu0 %1821 }
 0x588   : > { %v1887_v44 = vmul.f32 %v1871_v59, %v1871_v59  ;;  %v4046_v52 = vsub.f32 %v3873_v37, %v2019_v51  ;;  %v4048_v30 = vmul.f32 0.125, %v1822_v3  ;;  %v2091_v24 = vsel %vm493_vm1, %v2053_v16, 0.0 }
 0x589   : > { %v2006_v11 = vpop.xlane.xlu1 %2005  ;;  %2092 = vadd.xlane.f32.xlu1 %v2091_v24 }
 0x58a   : > { %v1872_v32 = vsub.f32 %v3880_v48, %v4048_v30  ;;  %v2024_v56 = vmul.f32 0.125, %v2006_v11  ;;  %v1913_v26 = vsel %vm493_vm1, %v1887_v44, 0.0  ;;  %v2051_v17 = vmul.f32 %v4046_v52, %v4046_v52 }
 0x58b   : > { %1914 = vadd.xlane.f32.xlu0 %v1913_v26  ;;  %v1825_v47 = vpop.xlane.xlu0 %1824 }
 0x58c   : > { %v1888_v4 = vmul.f32 %v1872_v32, %v1872_v32  ;;  %v4057_v37 = vsub.f32 %v3883_v28, %v2024_v56  ;;  %v4059_v12 = vmul.f32 0.125, %v1825_v47  ;;  %v2085_v46 = vsel %vm493_vm1, %v2051_v17, 0.0 }
 0x58d   : > { %2086 = vadd.xlane.f32.xlu1 %v2085_v46  ;;  %v2000_v21 = vpop.xlane.xlu1 %1999 }
 0x58e   : > { %v1873_v34 = vsub.f32 %v3890_v45, %v4059_v12  ;;  %v2022_v50 = vmul.f32 0.125, %v2000_v21  ;;  %v1916_v31 = vsel %vm493_vm1, %v1888_v4, 0.0  ;;  %v2056_v57 = vmul.f32 %v4057_v37, %v4057_v37 }
 0x58f   : > { %1917 = vadd.xlane.f32.xlu0 %v1916_v31  ;;  %v1828_v42 = vpop.xlane.xlu0 %1827 }
 0x590   : > { %v1889_v63 = vmul.f32 %v1873_v34, %v1873_v34  ;;  %v4068_v28 = vsub.f32 %v3893_v40, %v2022_v50  ;;  %v4070_v1 = vmul.f32 0.125, %v1828_v42  ;;  %v2100_v33 = vsel %vm493_vm1, %v2056_v57, 0.0 }
 0x591   : > { %2101 = vadd.xlane.f32.xlu1 %v2100_v33  ;;  %v2003_v55 = vpop.xlane.xlu1 %2002 }
 0x592   : > { %v1874_v61 = vsub.f32 %v3900_v41, %v4070_v1  ;;  %v2023_v59 = vmul.f32 0.125, %v2003_v55  ;;  %v1919_v51 = vsel %vm493_vm1, %v1889_v63, 0.0  ;;  %v2054_v43 = vmul.f32 %v4068_v28, %v4068_v28 }
 0x593   : > { %1920 = vadd.xlane.f32.xlu0 %v1919_v51  ;;  %v1834_v16 = vpop.xlane.xlu0 %1833 }
 0x594   : > { %v1890_v3 = vmul.f32 %v1874_v61, %v1874_v61  ;;  %v4079_v40 = vsub.f32 %v3903_v27, %v2023_v59  ;;  %v4081_v44 = vmul.f32 0.125, %v1834_v16  ;;  %v2094_v24 = vsel %vm493_vm1, %v2054_v43, 0.0 }
 0x595   : > { %2095 = vadd.xlane.f32.xlu1 %v2094_v24  ;;  %v2009_v11 = vpop.xlane.xlu1 %2008 }
 0x596   : > { %v1876_v32 = vsub.f32 %v3910_v18, %v4081_v44  ;;  %v2025_v56 = vmul.f32 0.125, %v2009_v11  ;;  %v1922_v26 = vsel %vm493_vm1, %v1890_v3, 0.0  ;;  %v2055_v17 = vmul.f32 %v4079_v40, %v4079_v40 }
 0x597   : > { %1923 = vadd.xlane.f32.xlu0 %v1922_v26  ;;  %v1840_v47 = vpop.xlane.xlu0 %1839 }
 0x598   : > { %v1892_v4 = vmul.f32 %v1876_v32, %v1876_v32  ;;  %v4090_v27 = vsub.f32 %v3913_v6, %v2025_v56  ;;  %v4092_v46 = vmul.f32 0.125, %v1840_v47  ;;  %v2097_v21 = vsel %vm493_vm1, %v2055_v17, 0.0 }
 0x599   : > { %2098 = vadd.xlane.f32.xlu1 %v2097_v21  ;;  %v1831_v34 = vpop.xlane.xlu1 %1830 }
 0x59a   : > { %4413 = vst [vmem:[#allocation12_spill] sm:$0xff] %v4090_v27  ;;  %v1878_v50 = vsub.f32 %v3922_v60, %v4092_v46  ;;  %v4097_v31 = vmul.f32 0.125, %v1831_v34  ;;  %v1928_v57 = vsel %vm493_vm1, %v1892_v4, 0.0  ;;  %v2057_v42 = vmul.f32 %v4090_v27, %v4090_v27 }
 0x59b   : > { %1929 = vadd.xlane.f32.xlu0 %v1928_v57  ;;  %v1846_v63 = vpop.xlane.xlu0 %1845 }
 0x59c   : > { %v1894_v6 = vmul.f32 %v1878_v50, %v1878_v50  ;;  %v1875_v33 = vsub.f32 %v3925_v0, %v4097_v31  ;;  %v4104_v55 = vmul.f32 0.125, %v1846_v63  ;;  %v2103_v61 = vsel %vm493_vm1, %v2057_v42, 0.0 }
 0x59d   : > { %2104 = vadd.xlane.f32.xlu1 %v2103_v61  ;;  %v1837_v59 = vpop.xlane.xlu1 %1836 }
 0x59e   : > { %v1891_v51 = vmul.f32 %v1875_v33, %v1875_v33  ;;  %v1880_v43 = vsub.f32 %v3936_v5, %v4104_v55  ;;  %v4109_v16 = vmul.f32 0.125, %v1837_v59  ;;  %v1934_v3 = vsel %vm493_vm1, %v1894_v6, 0.0 }
 0x59f   : > { %1935 = vadd.xlane.f32.xlu0 %v1934_v3  ;;  %v1903_v61 = vpop.xlane.xlu0 %1902 }
 0x5a0   : > { %v1896_v24 = vmul.f32 %v1880_v43, %v1880_v43  ;;  %v1877_v11 = vsub.f32 %v3941_v54, %v4109_v16  ;;  %v1925_v32 = vsel %vm493_vm1, %v1891_v51, 0.0 }
 0x5a1   : > { %1926 = vadd.xlane.f32.xlu1 %v1925_v32  ;;  %v1843_v56 = vpop.xlane.xlu1 %1842 }
 0x5a2   : > { %v1893_v26 = vmul.f32 %v1877_v11, %v1877_v11  ;;  %v4115_v17 = vmul.f32 0.125, %v1843_v56  ;;  %v1940_v47 = vsel %vm493_vm1, %v1896_v24, 0.0 }
 0x5a3   : > { %1941 = vadd.xlane.f32.xlu0 %v1940_v47  ;;  %v1906_v59 = vpop.xlane.xlu0 %1905 }
 0x5a4   : > { %4414 = vst [vmem:[#allocation13_spill] sm:$0xff] %v4115_v17  ;;  %v1879_v4 = vsub.f32 %v3954_v29, %v4115_v17  ;;  %v1931_v21 = vsel %vm493_vm1, %v1893_v26, 0.0 }
 0x5a5   : > { %1932 = vadd.xlane.f32.xlu1 %v1931_v21  ;;  %v1849_v34 = vpop.xlane.xlu1 %1848 }
 0x5a6   : > { %v1895_v50 = vmul.f32 %v1879_v4, %v1879_v4  ;;  %v4121_v57 = vmul.f32 0.125, %v1849_v34  ;;  %v2235_v4 = vlaneseq }
 0x5a7   : > { %v1909_v51 = vpop.xlane.xlu0 %1908 }
 0x5a8   : > { %4415 = vst [vmem:[#allocation14_spill] sm:$0xff] %v4121_v57  ;;  %v1881_v42 = vsub.f32 %v3964_v14, %v4121_v57  ;;  %v1937_v63 = vsel %vm493_vm1, %v1895_v50, 0.0  ;;  %v1949_v17 = vmul.f32 0.125, %v1909_v51 }
 0x5a9   : > { %1938 = vadd.xlane.f32.xlu1 %v1937_v63  ;;  %v4127_v43 = vpop.xlane.xlu1 %1899 }
 0x5aa   : > { %v1897_v6 = vmul.f32 %v1881_v42, %v1881_v42 }
 0x5ac   : > { %v1943_v33 = vsel %vm493_vm1, %v1897_v6, 0.0 }
 0x5ad   : > { %1944 = vadd.xlane.f32.xlu1 %v1943_v33  ;;  %v4130_v33 = vshrl.u32 %v2235_v4, 7 }
 0x5af   : > { %v4133_v14 = vadd.s32 16, %v4130_v33  ;;  %v4142_v4 = vadd.s32 32, %v4130_v33 }
 0x600   : > { %v2066_v3 = vpop.xlane.xlu0 %2065 }
 0x601   : > { %v2108_v24 = vmul.f32 0.125, %v2066_v3 }
 0x602   : > { %v2069_v11 = vpop.xlane.xlu1 %2068 }
 0x603   : > { %vm2124_vm2 = vcmp.gt.f32.partialorder %v2108_v24, 0.0  ;;  %v2109_v32 = vmul.f32 0.125, %v2069_v11 }
 0x604   : > { %v2140_v56 = vsel %vm2124_vm2, %v2108_v24, 1.0  ;;  %v2060_v26 = vpop.xlane.xlu0 %2059 }
 0x605   : > { %3017 = vrcp.f32 %v2140_v56  ;;  %vm2125_vm5 = vcmp.gt.f32.partialorder %v2109_v32, 0.0  ;;  %v2106_v47 = vmul.f32 0.125, %v2060_v26 }
 0x606   : > { %v2141_v21 = vsel %vm2125_vm5, %v2109_v32, 1.0  ;;  %v2063_v34 = vpop.xlane.xlu1 %2062 }
 0x607   : > { %3019 = vrcp.f32 %v2141_v21  ;;  %vm2122_vm6 = vcmp.gt.f32.partialorder %v2106_v47, 0.0  ;;  %v2107_v50 = vmul.f32 0.125, %v2063_v34  ;;  %v4139_v34 = vadd.s32 24, %v4130_v33 }
 0x608   : > { %v2138_v42 = vsel %vm2122_vm6, %v2106_v47, 1.0  ;;  %v2078_v63 = vpop.xlane.xlu0 %2077  ;;  %v4136_v47 = vadd.s32 8, %v4130_v33 }
 0x609   : > { %3021 = vrcp.f32 %v2138_v42  ;;  %vm2123_vm7 = vcmp.gt.f32.partialorder %v2107_v50, 0.0  ;;  %v2112_v6 = vmul.f32 0.125, %v2078_v63  ;;  %v1947_v63 = vmul.f32 0.125, %v1903_v61 }
 0x60a   : > { %v2139_v3 = vsel %vm2123_vm7, %v2107_v50, 1.0  ;;  %v2081_v24 = vpop.xlane.xlu1 %2080  ;;  %v4144_v50 = vstv %s2234_s28 }
 0x60b   : > { %3023 = vrcp.f32 %v2139_v3  ;;  %vm2128_vm8 = vcmp.gt.f32.partialorder %v2112_v6, 0.0  ;;  %v2113_v11 = vmul.f32 0.125, %v2081_v24  ;;  %v1948_v3 = vmul.f32 0.125, %v1906_v59 }
 0x60c   : > { %v2072_v56 = vpop.xlane.xlu0 %2071  ;;  %v2144_v26 = vsel %vm2128_vm8, %v2112_v6, 1.0  ;;  %vm2255_vm12 = vcmp.lt.s32.totalorder %v4133_v14, %v4144_v50  ;;  %vm2253_vm13 = vcmp.lt.s32.totalorder %v4130_v33, %v4144_v50  ;;  %vm2256_vm14 = vcmp.lt.s32.totalorder %v4139_v34, %v4144_v50 }
 0x60d   : > { %v2110_v32 = vmul.f32 0.125, %v2072_v56  ;;  %vm2129_vm9 = vcmp.gt.f32.partialorder %v2113_v11, 0.0  ;;  %3025 = vrcp.f32 %v2144_v26  ;;  %vm2254_vm15 = vcmp.lt.s32.totalorder %v4136_v47, %v4144_v50 }
 0x60e   : > { %v2075_v21 = vpop.xlane.xlu1 %2074  ;;  %v2145_v54 = vsel %vm2129_vm9, %v2113_v11, 1.0  ;;  %vm2257_vm2 = vcmp.lt.s32.totalorder %v4142_v4, %v4144_v50 }
 0x60f   : > { %v3018_v42 = vpop.eup %3017  ;;  %vm2126_vm10 = vcmp.gt.f32.partialorder %v2110_v32, 0.0  ;;  %v2111_v6 = vmul.f32 0.125, %v2075_v21 }
 0x610   : > { %v2172_v24 = vmul.f32 %v3018_v42, %v3972_v8  ;;  %v2142_v56 = vsel %vm2126_vm10, %v2110_v32, 1.0  ;;  %v1912_v57 = vpop.xlane.xlu0 %1911 }
 0x611   : > { %v3020_v29 = vpop.eup %3019  ;;  %3027 = vrcp.f32 %v2142_v56  ;;  %vm2127_vm11 = vcmp.gt.f32.partialorder %v2111_v6, 0.0  ;;  %v4177_v56 = vadd.s32 56, %v4130_v33 }
 0x612   : > { %v2188_v27 = vmul.f32 %v2172_v24, %v1948_v3  ;;  %v2173_v61 = vmul.f32 %v3020_v29, %v3975_v58  ;;  %v2143_v5 = vsel %vm2127_vm11, %v2111_v6, 1.0  ;;  %v2090_v21 = vpop.xlane.xlu1 %2089  ;;  %v4161_v29 = vadd.s32 40, %v4130_v33 }
 0x613   : > { %v3022_v59 = vpop.eup %3021  ;;  %3029 = vrcp.f32 %v2143_v5  ;;  %v2116_v8 = vmul.f32 0.125, %v2090_v21  ;;  %v1946_v58 = vmul.f32 0.125, %v4127_v43  ;;  %v4169_v6 = vadd.s32 48, %v4130_v33 }
 0x614   : > { %v2204_v51 = vadd.f32 %v2188_v27, %v3933_v23  ;;  %v2189_v11 = vmul.f32 %v2173_v61, %v1949_v17  ;;  %v2170_v26 = vmul.f32 %v3022_v59, %v3980_v2  ;;  %v2084_v5 = vpop.xlane.xlu0 %2083  ;;  %3031 = vrcp.f32 %v2145_v54  ;;  %v3049_v17 = vld [vmem:[%s3760_s24 + $0x10] sm:$0xff]  ;;  %v3050_v59 = vld [vmem:[%s3760_s24 + $0x18] sm:$0xff] }
 0x615   : > { %v3024_v32 = vpop.eup %3023  ;;  %vm2132_vm0 = vcmp.gt.f32.partialorder %v2116_v8, 0.0  ;;  %v2114_v42 = vmul.f32 0.125, %v2084_v5  ;;  %vm2258_vm5 = vcmp.lt.s32.totalorder %v4161_v29, %v4144_v50  ;;  %vm2259_vm9 = vcmp.lt.s32.totalorder %v4169_v6, %v4144_v50 }
 0x616   : > { %2220 = vst.msk [vmem:[%s4154_s25 + $0x10] sm:$0xff] %vm493_vm1, %v2204_v51  ;;  %v2205_v23 = vadd.f32 %v2189_v11, %v3947_v22  ;;  %v2186_v27 = vmul.f32 %v2170_v26, %v1946_v58  ;;  %v2171_v2 = vmul.f32 %v3024_v32, %v3986_v38  ;;  %v2271_v43 = vsub.f32 %v2204_v51, %v3049_v17  ;;  %v2093_v54 = vpop.xlane.xlu1 %2092 }
 0x617   : > { %v2148_v3 = vsel %vm2132_vm0, %v2116_v8, 1.0  ;;  %vm2130_vm3 = vcmp.gt.f32.partialorder %v2114_v42, 0.0  ;;  %v2117_v24 = vmul.f32 0.125, %v2093_v54  ;;  %v1950_v38 = vmul.f32 0.125, %v1912_v57  ;;  %v3026_v8 = vpop.eup %3025 }
 0x618   : > { %2221 = vst.msk [vmem:[%s4154_s25 + $0x18] sm:$0xff] %vm493_vm1, %v2205_v23  ;;  %v2202_v61 = vadd.f32 %v2186_v27, %v3951_v53  ;;  %v2187_v21 = vmul.f32 %v2171_v2, %v1947_v63  ;;  %v2272_v22 = vsub.f32 %v2205_v23, %v3050_v59  ;;  %v2287_v58 = vmul.f32 %v2271_v43, %v2271_v43  ;;  %v1915_v11 = vpop.xlane.xlu0 %1914 }
 0x619   : > { %3033 = vrcp.f32 %v2148_v3  ;;  %v2146_v51 = vsel %vm2130_vm3, %v2114_v42, 1.0  ;;  %vm2133_vm4 = vcmp.gt.f32.partialorder %v2117_v24, 0.0  ;;  %v1951_v42 = vmul.f32 0.125, %v1915_v11 }
 0x61a   : > { %2218 = vst.msk [vmem:[%s4154_s25] sm:$0xff] %vm493_vm1, %v2202_v61  ;;  %v2269_v26 = vsub.f32 %v2202_v61, %v3796_v25  ;;  %v2203_v5 = vadd.f32 %v2187_v21, %v3919_v15  ;;  %v2288_v32 = vmul.f32 %v2272_v22, %v2272_v22  ;;  %v2335_v53 = vsel %vm2255_vm12, %v2287_v58, 0.0  ;;  %v2087_v63 = vpop.xlane.xlu1 %2086  ;;  %v3051_v25 = vld [vmem:[%s3760_s24 + $0x8] sm:$0xff]  ;;  %s2414_s24 = sshll.u32 %s3791_s19, 4  ;;  %s3068_s19 = sshll.u32 %s3131_s16, 4  ;;  %s4333_s24 = int_to_ptr.vmem [resolvable:$true] %s2414_s24  ;;  %s3069_s19 = int_to_ptr.vmem [resolvable:$false] %s3068_s19 }
 0x61b   : > { %v3028_v23 = vpop.eup %3027  ;;  %3035 = vrcp.f32 %v2146_v51  ;;  %v2149_v57 = vsel %vm2133_vm4, %v2117_v24, 1.0  ;;  %v2115_v27 = vmul.f32 0.125, %v2087_v63  ;;  %v2352_v3 = vsel %vm493_vm1, %v2335_v53, 0.0  ;;  %s3064_s1 = scalar_lea.vmem %s4333_s24, 1024  ;;  %s3070_s2 = scalar_lea.vmem %s3069_s19, 2048 }
 0x61c   : > { %v2285_v2 = vmul.f32 %v2269_v26, %v2269_v26  ;;  %2219 = vst.msk [vmem:[%s4154_s25 + $0x8] sm:$0xff] %vm493_vm1, %v2203_v5  ;;  %v2270_v17 = vsub.f32 %v2203_v5, %v3051_v25  ;;  %v2174_v15 = vmul.f32 %v3028_v23, %v4004_v10  ;;  %v2336_v14 = vsel %vm2256_vm14, %v2288_v32, 0.0  ;;  %v1918_v43 = vpop.xlane.xlu0 %1917  ;;  %p3065_p2 = scmp.ne.s32.totalorder %s4333_s24, %s3064_s1  ;;  %p3071_p5 = scmp.lt.s32.totalorder %s4333_s24, %s3069_s19 }
 0x61d   : > { %v3030_v54 = vpop.eup %3029  ;;  %v2354_v61 = vsel %vm493_vm1, %v2336_v14, 0.0  ;;  %3037 = vrcp.f32 %v2149_v57  ;;  %vm2131_vm6 = vcmp.gt.f32.partialorder %v2115_v27, 0.0  ;;  %v2176_v11 = vmul.f32 %v3026_v8, %v3992_v19  ;;  %p3072_p6 = scmp.lt.s32.totalorder %s3070_s2, %s3064_s1 }
 0x61e   : > { %v2286_v24 = vmul.f32 %v2270_v17, %v2270_v17  ;;  %v2333_v10 = vsel %vm2253_vm13, %v2285_v2, 0.0  ;;  %v2190_v21 = vmul.f32 %v2174_v15, %v1950_v38  ;;  %v2175_v34 = vmul.f32 %v3030_v54, %v4010_v49  ;;  %v2102_v59 = vpop.xlane.xlu1 %2101  ;;  %v3032_v22 = vpop.eup %3031  ;;  %p3066_p3 = pnand %p3065_p2, %p3245_p10 }
 0x61f   : > { %v2147_v58 = vsel %vm2131_vm6, %v2115_v27, 1.0  ;;  %v1952_v51 = vmul.f32 0.125, %v1918_v43  ;;  %v2120_v26 = vmul.f32 0.125, %v2102_v59  ;;  %v2349_v32 = vsel %vm493_vm1, %v2333_v10, 0.0  ;;  %p3073_p7 = por %p3072_p6, %p3071_p5 }
 0x620   : > { %v2334_v5 = vsel %vm2254_vm15, %v2286_v24, 0.0  ;;  %v2206_v53 = vadd.f32 %v2190_v21, %v4012_v7  ;;  %v2191_v63 = vmul.f32 %v2175_v34, %v1951_v42  ;;  %v1921_v38 = vpop.xlane.xlu0 %1920  ;;  %3039 = vrcp.f32 %v2147_v58  ;;  %p3067_p4 = pneg %p3066_p3 }
 0x621   : > { %v2350_v49 = vsel %vm493_vm1, %v2334_v5, 0.0  ;;  %v2192_v23 = vmul.f32 %v2176_v11, %v1952_v51  ;;  %vm2136_vm7 = vcmp.gt.f32.partialorder %v2120_v26, 0.0  ;;  %v2177_v42 = vmul.f32 %v3032_v22, %v3998_v9 }
 0x622   : > { %v2351_v57 = vadd.f32 %v2350_v49, %v2349_v32  ;;  %2222 = vst.msk [vmem:[%s4154_s25 + $0x20] sm:$0xff] %vm493_vm1, %v2206_v53  ;;  %v2273_v19 = vsub.f32 %v2206_v53, %v3848_v62  ;;  %v2207_v47 = vadd.f32 %v2191_v63, %v4035_v13  ;;  %v2152_v8 = vsel %vm2136_vm7, %v2120_v26, 1.0  ;;  %v2096_v27 = vpop.xlane.xlu1 %2095  ;;  %p3074_p8 = pnand %p3073_p7, %p3067_p4 }
 0x623   : > { %v3034_v2 = vpop.eup %3033  ;;  %v2208_v7 = vadd.f32 %v2192_v23, %v4048_v30  ;;  %v1953_v25 = vmul.f32 0.125, %v1921_v38  ;;  %v2118_v17 = vmul.f32 0.125, %v2096_v27  ;;  %3041 = vrcp.f32 %v2152_v8 }
 0x624   : > { %v2353_v15 = vadd.f32 %v2352_v3, %v2351_v57  ;;  %v2289_v14 = vmul.f32 %v2273_v19, %v2273_v19  ;;  %2223 = vst.msk [vmem:[%s4154_s25 + $0x28] sm:$0xff] %vm493_vm1, %v2207_v47  ;;  %v2274_v43 = vsub.f32 %v2207_v47, %v3868_v35  ;;  %v1924_v62 = vpop.xlane.xlu0 %1923  ;;  %v2180_v11 = vmul.f32 %v3034_v2, %v4023_v39 }
 0x625   : > { %v3036_v54 = vpop.eup %3035  ;;  %2224 = vst.msk [vmem:[%s4154_s25 + $0x30] sm:$0xff] %vm493_vm1, %v2208_v7  ;;  %v2275_v13 = vsub.f32 %v2208_v7, %v3880_v48  ;;  %v2193_v24 = vmul.f32 %v2177_v42, %v1953_v25  ;;  %vm2134_vm8 = vcmp.gt.f32.partialorder %v2118_v17, 0.0  ;;  %v1954_v30 = vmul.f32 0.125, %v1924_v62 }
 0x626   : > { %v2355_v10 = vadd.f32 %v2354_v61, %v2353_v15  ;;  %v2337_v9 = vsel %vm2257_vm2, %v2289_v14, 0.0  ;;  %v2290_v3 = vmul.f32 %v2274_v43, %v2274_v43  ;;  %v2150_v21 = vsel %vm2134_vm8, %v2118_v17, 1.0  ;;  %v2099_v34 = vpop.xlane.xlu1 %2098 }
 0x627   : > { %v4229_v35 = vpop.eup %3037  ;;  %v2356_v59 = vsel %vm493_vm1, %v2337_v9, 0.0  ;;  %v2209_v22 = vadd.f32 %v2193_v24, %v4059_v12  ;;  %3043 = vrcp.f32 %v2150_v21  ;;  %v2244_v48 = vadd.s32 64, %v4130_v33 }
 0x628   : > { %v2338_v61 = vsel %vm2258_vm5, %v2290_v3, 0.0  ;;  %v2178_v4 = vmul.f32 %v3036_v54, %v4027_v36  ;;  %v2119_v58 = vmul.f32 0.125, %v2099_v34  ;;  %v1930_v51 = vpop.xlane.xlu0 %1929  ;;  %v2357_v26 = vadd.f32 %v2356_v59, %v2355_v10 }
 0x629   : > { %v2291_v5 = vmul.f32 %v2275_v13, %v2275_v13  ;;  %2225 = vst.msk [vmem:[%s4154_s25 + $0x38] sm:$0xff] %vm493_vm1, %v2209_v22  ;;  %v2276_v32 = vsub.f32 %v2209_v22, %v3890_v45  ;;  %v1956_v12 = vmul.f32 0.125, %v1930_v51  ;;  %v2358_v53 = vsel %vm493_vm1, %v2338_v61, 0.0 }
 0x62a   : > { %v2194_v29 = vmul.f32 %v2178_v4, %v1954_v30  ;;  %vm2135_vm10 = vcmp.gt.f32.partialorder %v2119_v58, 0.0  ;;  %v2105_v63 = vpop.xlane.xlu1 %2104  ;;  %v3040_v36 = vpop.eup %3039  ;;  %vm2260_vm11 = vcmp.lt.s32.totalorder %v4177_v56, %v4144_v50  ;;  %vm2261_vm12 = vcmp.lt.s32.totalorder %v2244_v48, %v4144_v50 }
 0x62b   : > { %v2292_v38 = vmul.f32 %v2276_v32, %v2276_v32  ;;  %v2151_v39 = vsel %vm2135_vm10, %v2119_v58, 1.0  ;;  %v2196_v49 = vmul.f32 %v2180_v11, %v1956_v12  ;;  %v2121_v23 = vmul.f32 0.125, %v2105_v63 }
 0x62c   : > { %v2210_v45 = vadd.f32 %v2194_v29, %v4070_v1  ;;  %3045 = vrcp.f32 %v2151_v39  ;;  %v1936_v57 = vpop.xlane.xlu0 %1935  ;;  %v2359_v6 = vadd.f32 %v2358_v53, %v2357_v26  ;;  %v2339_v19 = vsel %vm2259_vm9, %v2291_v5, 0.0 }
 0x62d   : > { %v2212_v47 = vadd.f32 %v2196_v49, %v4081_v44  ;;  %vm2137_vm13 = vcmp.gt.f32.partialorder %v2121_v23, 0.0  ;;  %v3042_v8 = vpop.eup %3041  ;;  %v2246_v2 = vadd.s32 80, %v4130_v33  ;;  %v4255_v42 = vadd.s32 96, %v4130_v33 }
 0x62e   : > { %2226 = vst.msk [vmem:[%s4154_s25 + $0x40] sm:$0xff] %vm493_vm1, %v2210_v45  ;;  %v2277_v27 = vsub.f32 %v2210_v45, %v3900_v41  ;;  %v2153_v7 = vsel %vm2137_vm13, %v2121_v23, 1.0  ;;  %v1927_v25 = vpop.xlane.xlu1 %1926  ;;  %v2340_v1 = vsel %vm2260_vm11, %v2292_v38, 0.0  ;;  %v2179_v44 = vmul.f32 %v3040_v36, %v4046_v52  ;;  %v4416_v36 = vld [vmem:[#allocation8_spill] sm:$0xff]  ;;  %v4417_v23 = vld [vmem:[#allocation9_spill] sm:$0xff] }
 0x62f   : > { %2228 = vst.msk [vmem:[%s4154_s25 + $0x50] sm:$0xff] %vm493_vm1, %v2212_v47  ;;  %3047 = vrcp.f32 %v2153_v7  ;;  %v1955_v17 = vmul.f32 0.125, %v1927_v25  ;;  %v2360_v15 = vsel %vm493_vm1, %v2339_v19, 0.0  ;;  %v2279_v14 = vsub.f32 %v2212_v47, %v3910_v18  ;;  %v4419_v19 = vld [vmem:[#allocation13_spill] sm:$0xff] }
 0x630   : > { %v2293_v41 = vmul.f32 %v2277_v27, %v2277_v27  ;;  %v1958_v43 = vmul.f32 0.125, %v1936_v57  ;;  %v1942_v62 = vpop.xlane.xlu0 %1941  ;;  %v2361_v13 = vadd.f32 %v2360_v15, %v2359_v6  ;;  %v2184_v30 = vmul.f32 %v3042_v8, %v4057_v37  ;;  %v4418_v57 = vld [vmem:[#allocation12_spill] sm:$0xff] }
 0x631   : > { %v3044_v54 = vpop.eup %3043  ;;  %v2195_v24 = vmul.f32 %v2179_v44, %v1955_v17  ;;  %v1960_v56 = vmul.f32 0.125, %v1942_v62  ;;  %v2362_v10 = vsel %vm493_vm1, %v2340_v1, 0.0  ;;  %vm2263_vm14 = vcmp.lt.s32.totalorder %v2246_v2, %v4144_v50  ;;  %v4420_v1 = vld [vmem:[#allocation10_spill] sm:$0xff] }
 0x632   : > { %v2182_v52 = vmul.f32 %v3044_v54, %v4068_v28  ;;  %v2245_v9 = vadd.s32 72, %v4130_v33  ;;  %v1933_v3 = vpop.xlane.xlu1 %1932  ;;  %v2341_v18 = vsel %vm2261_vm12, %v2293_v41, 0.0  ;;  %v2247_v59 = vadd.s32 88, %v4130_v33 }
 0x633   : > { %v2211_v21 = vadd.f32 %v2195_v24, %v4097_v31  ;;  %v2200_v34 = vmul.f32 %v2184_v30, %v1960_v56  ;;  %v2295_v37 = vmul.f32 %v2279_v14, %v2279_v14  ;;  %v2181_v61 = vmul.f32 %v4229_v35, %v4033_v20 }
 0x634   : > { %v2198_v22 = vmul.f32 %v2182_v52, %v1958_v43  ;;  %v1957_v4 = vmul.f32 0.125, %v1933_v3  ;;  %v2363_v58 = vadd.f32 %v2362_v10, %v2361_v13  ;;  %vm2265_vm15 = vcmp.lt.s32.totalorder %v4255_v42, %v4144_v50  ;;  %v4421_v13 = vld [vmem:[#allocation14_spill] sm:$0xff]  ;;  %v4422_v42 = vld [vmem:[#allocation11_spill] sm:$0xff] }
 0x635   : > { %2227 = vst.msk [vmem:[%s4154_s25 + $0x48] sm:$0xff] %vm493_vm1, %v2211_v21  ;;  %v2278_v28 = vsub.f32 %v2211_v21, %v3925_v0  ;;  %v2216_v31 = vadd.f32 %v2200_v34, %v4104_v55  ;;  %v2364_v11 = vsel %vm493_vm1, %v2341_v18, 0.0  ;;  %vm2262_vm0 = vcmp.lt.s32.totalorder %v2245_v9, %v4144_v50 }
 0x636   : > { %v3046_v48 = vpop.eup %3045  ;;  %v2214_v51 = vadd.f32 %v2198_v22, %v4092_v46  ;;  %v2197_v20 = vmul.f32 %v2181_v61, %v1957_v4  ;;  %v1939_v35 = vpop.xlane.xlu1 %1938  ;;  %vm2264_vm3 = vcmp.lt.s32.totalorder %v2247_v59, %v4144_v50  ;;  %v2343_v55 = vsel %vm2263_vm14, %v2295_v37, 0.0 }
 0x637   : > { %v2294_v26 = vmul.f32 %v2278_v28, %v2278_v28  ;;  %2232 = vst.msk [vmem:[%s4154_s25 + $0x70] sm:$0xff] %vm493_vm1, %v2216_v31  ;;  %v2183_v5 = vmul.f32 %v3046_v48, %v4079_v40  ;;  %v1959_v0 = vmul.f32 0.125, %v1939_v35  ;;  %v2249_v12 = vadd.s32 104, %v4130_v33 }
 0x638   : > { %2230 = vst.msk [vmem:[%s4154_s25 + $0x60] sm:$0xff] %vm493_vm1, %v2214_v51  ;;  %v2281_v46 = vsub.f32 %v2214_v51, %v3922_v60  ;;  %v2213_v32 = vadd.f32 %v2197_v20, %v4109_v16  ;;  %v2365_v29 = vadd.f32 %v2364_v11, %v2363_v58  ;;  %v2283_v38 = vsub.f32 %v2216_v31, %v4416_v36 }
 0x639   : > { %v3048_v53 = vpop.eup %3047  ;;  %v2342_v63 = vsel %vm2262_vm0, %v2294_v26, 0.0  ;;  %v2199_v39 = vmul.f32 %v2183_v5, %v1959_v0  ;;  %v2250_v27 = vadd.s32 112, %v4130_v33  ;;  %v2368_v2 = vsel %vm493_vm1, %v2343_v55, 0.0 }
 0x63a   : > { %v2297_v40 = vmul.f32 %v2281_v46, %v2281_v46  ;;  %v2366_v49 = vsel %vm493_vm1, %v2342_v63, 0.0  ;;  %2229 = vst.msk [vmem:[%s4154_s25 + $0x58] sm:$0xff] %vm493_vm1, %v2213_v32  ;;  %v2280_v45 = vsub.f32 %v2213_v32, %v4417_v23  ;;  %v2185_v60 = vmul.f32 %v3048_v53, %v4418_v57  ;;  %v1945_v6 = vpop.xlane.xlu1 %1944 }
 0x63b   : > { %v2367_v16 = vadd.f32 %v2366_v49, %v2365_v29  ;;  %v2215_v47 = vadd.f32 %v2199_v39, %v4419_v19  ;;  %v1961_v8 = vmul.f32 0.125, %v1945_v6  ;;  %vm2266_vm4 = vcmp.lt.s32.totalorder %v2249_v12, %v4144_v50 }
 0x63c   : > { %v2296_v7 = vmul.f32 %v2280_v45, %v2280_v45  ;;  %v2345_v15 = vsel %vm2265_vm15, %v2297_v40, 0.0  ;;  %v2299_v41 = vmul.f32 %v2283_v38, %v2283_v38  ;;  %v2251_v43 = vadd.s32 120, %v4130_v33 }
 0x63d   : > { %v2369_v25 = vadd.f32 %v2368_v2, %v2367_v16  ;;  %2231 = vst.msk [vmem:[%s4154_s25 + $0x68] sm:$0xff] %vm493_vm1, %v2215_v47  ;;  %v2282_v44 = vsub.f32 %v2215_v47, %v4420_v1  ;;  %v2201_v17 = vmul.f32 %v2185_v60, %v1961_v8  ;;  %vm2267_vm2 = vcmp.lt.s32.totalorder %v2250_v27, %v4144_v50 }
 0x63e   : > { %v2344_v14 = vsel %vm2264_vm3, %v2296_v7, 0.0  ;;  %v2372_v56 = vsel %vm493_vm1, %v2345_v15, 0.0  ;;  %vm2268_vm5 = vcmp.lt.s32.totalorder %v2251_v43, %v4144_v50  ;;  %v2347_v33 = vsel %vm2267_vm2, %v2299_v41, 0.0 }
 0x63f   : > { %v2370_v62 = vsel %vm493_vm1, %v2344_v14, 0.0  ;;  %v2298_v54 = vmul.f32 %v2282_v44, %v2282_v44  ;;  %v2217_v24 = vadd.f32 %v2201_v17, %v4421_v13  ;;  %v2376_v59 = vsel %vm493_vm1, %v2347_v33, 0.0 }
 0x640   : > { %v2371_v30 = vadd.f32 %v2370_v62, %v2369_v25 }
 0x641   : > { %v2346_v10 = vsel %vm2266_vm4, %v2298_v54, 0.0  ;;  %2233 = vst.msk [vmem:[%s4154_s25 + $0x78] sm:$0xff] %vm493_vm1, %v2217_v24  ;;  %v2284_v52 = vsub.f32 %v2217_v24, %v4422_v42  ;;  %s4337_s25 = scalar_lea.sflag [#allocation5], %s427_s29 }
 0x642   : > { %v2373_v9 = vadd.f32 %v2372_v56, %v2371_v30  ;;  %v2374_v3 = vsel %vm493_vm1, %v2346_v10, 0.0 }
 0x643   : > { %v2300_v18 = vmul.f32 %v2284_v52, %v2284_v52 }
 0x644   : > { %v2375_v21 = vadd.f32 %v2374_v3, %v2373_v9 }
 0x645   : > { %v2348_v34 = vsel %vm2268_vm5, %v2300_v18, 0.0 }
 0x646   : > { %v2377_v37 = vadd.f32 %v2376_v59, %v2375_v21  ;;  %v2378_v22 = vsel %vm493_vm1, %v2348_v34, 0.0 }
 0x648   : > { %v2379_v61 = vadd.f32 %v2378_v22, %v2377_v37 }
 0x64a   : > { %2380 = vadd.xlane.f32.xlu0 %v2379_v61 }
 0x64b   : > { %3077 = shalt.err (!%p3074_p8)
}
 0x64c   : > { %s3078_s29 = scalar_lea.hbm %s4331_s20, 1024  ;;  %s3082_s17 = scalar_lea.hbm %s4393_s11, 2048 }
 0x64d   : > { %p3079_p9 = scmp.ne.s32.totalorder %s4331_s20, %s3078_s29  ;;  %p3083_p0 = scmp.lt.u32.totalorder %s4331_s20, %s4393_s11 }
 0x64e   : > { %p3084_p1 = scmp.lt.u32.totalorder %s3082_s17, %s3078_s29  ;;  %p3086_p3 = scmp.lt.u32.totalorder %s3078_s29, %s4331_s20 }
 0x64f   : > { %p3080_p12 = pnand %p3079_p9, %p3245_p10 }
 0x650   : > { %p3085_p2 = por %p3084_p1, %p3083_p0 }
 0x651   : > { %p3081_p13 = pneg %p3080_p12 }
 0x652   : > { %p3087_p4 = por %p3086_p3, %p3085_p2 }
 0x654   : > { %p3088_p5 = pnand %p3087_p4, %p3081_p13 }
 0x656   : > { %3091 = shalt.err (!%p3088_p5)
}
 0x657   : > { %s3132_s1 = smov 64   ;;  %s3133_s2 = smov 4   ;;  %vm2390_vm1 = vcmask 0  }
 0x658   : > { %2875 = dma.vmem_to_hbm [thread:$0]  (%p3245_p10), %s4333_s24, 1024, %s4331_s20, %s4337_s25, %s3132_s1, %s3132_s1, %s3133_s2  }
 0x659   : > { %s459_s28 = scalar_lea.vmem %s4395_s13, %s3262_s26 }
 0x6d7   : > { %v2381_v50 = vpop.xlane.xlu0 %2380 }
 0x6d8   : > { %v2382_v4 = vrot.slane %v2381_v50, 4 }
 0x6da   : > { %v2383_v58 = vadd.f32 %v2382_v4, %v2381_v50 }
 0x6dc   : > { %v2384_v28 = vrot.slane %v2383_v58, 2 }
 0x6de   : > { %v2385_v31 = vadd.f32 %v2384_v28, %v2383_v58 }
 0x6e0   : > { %v2386_v48 = vrot.slane %v2385_v31, 1 }
 0x6e2   : > { %v2387_v11 = vadd.f32 %v2386_v48, %v2385_v31 }
 0x6e4   : > { %2873 = vpush %v2387_v11 }
 0x715   : > { %s2874_s17 = spop %2873 }
 0x716   : > { %v2389_v51 = vstv %s2874_s17 }
 0x717   : > { %2391 = vst.msk [vmem:[%s459_s28] sm:$0x1] %vm2390_vm1, %v2389_v51 }
 0x718 PF: > { %p2881_p10 = scmp.ge.s32.totalorder %s3128_s15, 2  ;;  %s2435_s22 = sand.u32 1, %s3116_s30  }
 0x719   : > { %s2436_s24 = scalar_lea.sflag [#allocation5], %s2435_s22 }
 0x71a   : > { %p2878_p6 = pnand %p2881_p10, %p3249_p11 }
 0x71c   : > { %3111 = dma.done.wait (!%p2878_p6), %s2436_s24, 1024  }
 0x71d   : > { %3113 = vsyncadd (!%p2878_p6), %s2436_s24, 4294966272  ;;  %p30_p7 = scmp.ge.s32.totalorder %s3232_s18, 4   ;;  %s4423_s30 = smov %s3120_s14 }
 0x71e   : > { %s4424_s14 = smov %s3124_s0  ;;  %s4425_s0 = smov %s3243_s21 }
 0x71f   : > { %s4426_s15 = smov %s3232_s18  ;;  %32 = sbr.rel (!%p30_p7) target bundleno = 19 (0x13), region = 122 }
 0x726   :  { %2455 = vsyncpa [#allocation5], 1 }
 0x727   :  { %2457 = vsyncpa [#allocation5 + $0x1], 1 }

</bundles_post_ra>
